<compile_context>
chip_gen: v7x
topology: tpu7x:2x2x1
jax: 0.10.0
libtpu: 0.0.40
codegen_flags: <defaults>
</compile_context>

<pallas_src>
import functools

import jax
import jax.numpy as jnp
from jax.experimental import pallas as pl
from jax.experimental.pallas import tpu as pltpu


def _conv_module_kernel(
    x_ref,                      # (1, Tt, D)      input tile
    halo_ref,                   # (1, 1, 2p, D)   neighbour rows (depthwise halo)
    g1_ref, b1_ref,             # (1, D)          LayerNorm #1 (eps=1e-6)
    w1_ref, wb1_ref,            # (D, 2E) bf16 / (1, 2E) f32  fused pointwise #1 (GLU)
    dw_ref, dwb_ref,            # (K, E), (1, E)  depthwise conv (BatchNorm folded in)
    w2_ref, wb2_ref,            # (E, E) bf16 / (1, E) f32    pointwise #2
    g2_ref, b2_ref,             # (1, E)          LayerNorm #2 (eps=1e-5)
    o_ref,                      # (1, Tt, E)      output tile
    xext_ref,                   # (EXT, D) f32 scratch: x tile + halo rows
    gext_ref,                   # (EXT, E) f32 scratch: GLU output + halo rows
    *, kernel_size: int, halo_off: int, seq_len: int,
):
    Tt = x_ref.shape[1]
    D = x_ref.shape[2]
    E = o_ref.shape[2]
    K = kernel_size
    pad = (K - 1) // 2
    Hp = halo_off                       # sublane-aligned halo offset (multiple of 8, >= pad)
    EXT = Tt + 2 * Hp

    # ---- assemble the extended input tile in a sublane-aligned scratch ------
    #   rows [0, Hp-pad)          zero flank (never read by depthwise slices)
    #   rows [Hp-pad, Hp)         lower halo
    #   rows [Hp, Hp+Tt)          this tile           (aligned full-width store)
    #   rows [Hp+Tt, Hp+Tt+pad)   upper halo
    #   rows [Hp+Tt+pad, EXT)     zero flank
    if Hp > pad:
        zf = jnp.zeros((Hp - pad, D), jnp.float32)
        xext_ref[pl.ds(0, Hp - pad), :] = zf
        xext_ref[pl.ds(Hp + Tt + pad, Hp - pad), :] = zf
    halo = halo_ref[0, 0].astype(jnp.float32)        # (2*pad, D), tiny
    xext_ref[pl.ds(Hp - pad, pad), :] = halo[:pad]
    xext_ref[pl.ds(Hp, Tt), :] = x_ref[0].astype(jnp.float32)
    xext_ref[pl.ds(Hp + Tt, pad), :] = halo[pad:]

    xe = xext_ref[...]                                # (EXT, D)

    # ---- LayerNorm #1 (eps=1e-6), row-wise -----------------------------------
    mu = jnp.mean(xe, axis=-1, keepdims=True)
    var = jnp.mean((xe - mu) ** 2, axis=-1, keepdims=True)
    xn = (xe - mu) * jax.lax.rsqrt(var + 1e-6) * g1_ref[...] + b1_ref[...]

    # ---- fused pointwise Conv1d(D -> 2E) + GLU (bf16 MXU, f32 accumulate) ----
    h = jnp.dot(xn.astype(jnp.bfloat16), w1_ref[...],
                preferred_element_type=jnp.float32) + wb1_ref[...]
    g = h[:, :E] * jax.nn.sigmoid(h[:, E:])           # GLU; split at lane-group boundary

    # ---- zero rows outside the real sequence ---------------------------------
    # Matches the reference depthwise conv's zero padding at the sequence edges
    # and also masks the ragged last tile's padded tail.
    t = pl.program_id(1)
    row = jax.lax.broadcasted_iota(jnp.int32, (EXT, E), 0)
    pos = t * Tt + row - Hp                           # global sequence position of each row
    g = jnp.where(jnp.logical_and(pos >= 0, pos < seq_len), g, 0.0)
    gext_ref[...] = g                                 # aligned full-width store

    # ---- depthwise Conv1d(E, E, K, groups=E, stride=1, 'same'), BN folded ----
    # K static sublane-offset slices of the scratch (vld slot, not XLU);
    # accumulator sized (Tt, E), initialised from tap k=0.
    # TODO(synk): on v5e (3 XLU units) a pltpu.roll-based tap walk may be
    # slightly cheaper; pick per-generation from the bundle dump.
    acc = gext_ref[pl.ds(Hp - pad, Tt), :] * dw_ref[0:1, :]
    for k in range(1, K):                             # K is small & static
        acc = acc + gext_ref[pl.ds(Hp - pad + k, Tt), :] * dw_ref[k:k + 1, :]
    y = acc + dwb_ref[...]                            # folded BatchNorm bias

    # ---- Swish ----------------------------------------------------------------
    y = y * jax.nn.sigmoid(y)

    # ---- pointwise Conv1d(E -> E, kernel=1): bf16 operands, f32 accumulate ----
    z = jnp.dot(y.astype(jnp.bfloat16), w2_ref[...],
                preferred_element_type=jnp.float32) + wb2_ref[...]

    # ---- Dropout (eval: identity), residual add, final LayerNorm (eps=1e-5) ---
    r = z + x_ref[0].astype(jnp.float32)              # re-read input tile (already in VMEM)
    mu2 = jnp.mean(r, axis=-1, keepdims=True)
    var2 = jnp.mean((r - mu2) ** 2, axis=-1, keepdims=True)
    out = (r - mu2) * jax.lax.rsqrt(var2 + 1e-5) * g2_ref[...] + b2_ref[...]

    o_ref[0] = out.astype(o_ref.dtype)


def conv_module_forward(x, params, kernel_size, *, t_tile=None, out_dtype=None):
    """x: (B, T, D). Returns (B, T, E) with E == D (eval-mode forward)."""
    B, T, D = x.shape
    E = params["ln2_gamma"].shape[-1]
    K = kernel_size
    assert E == D, "residual connection requires dim_expand == dim_model"
    assert K % 2 == 1 and K >= 3, "'same' depthwise conv implemented for odd kernel_size >= 3"
    pad = (K - 1) // 2
    out_dtype = x.dtype if out_dtype is None else out_dtype

    # ---- T tiling: prefer large tiles (HBM roofline) but keep >= ~8 steps ----
    if t_tile is None:
        t_tile = 512
        while t_tile > 64 and B * (-(-T // t_tile)) < 8:
            t_tile //= 2
    assert t_tile % 8 == 0 and pad <= t_tile
    n_t = -(-T // t_tile)                   # ragged last tile is masked in-kernel
    T_pad = n_t * t_tile
    Hp = max(8, ((pad + 7) // 8) * 8)       # sublane-aligned halo offset in scratch
    EXT = t_tile + 2 * Hp

    # ---- host-side (one-time) parameter preparation --------------------------
    # Fold inference BatchNorm into the depthwise conv weight/bias.
    bn_scale = params["bn_gamma"] * jax.lax.rsqrt(params["bn_var"] + 1e-5)      # (1, E)
    dw_w = params["dw_w"] * bn_scale                                            # (K, E)
    dw_b = (params["dw_b"] - params["bn_mean"]) * bn_scale + params["bn_beta"]  # (1, E)
    w1 = params["pw1_w"].astype(jnp.bfloat16)   # fused (D, 2E) GLU weight, bf16 MXU operand
    w2 = params["pw2_w"].astype(jnp.bfloat16)

    param_list = [
        params["ln1_gamma"], params["ln1_beta"],
        w1, params["pw1_b"],
        dw_w, dw_b,
        w2, params["pw2_b"],
        params["ln2_gamma"], params["ln2_beta"],
    ]

    # ---- rectangularize only when the last tile is ragged ---------------------
    x_p = x if T_pad == T else jnp.pad(x, ((0, 0), (0, T_pad - T), (0, 0)))

    # ---- per-tile halo rows: pad rows of the previous / next tile (tiny) ------
    # No full padded copy of x; only (B, n_t, 2*pad, D) is gathered.
    xr = x_p.reshape(B, n_t, t_tile, D)
    zpad = jnp.zeros((B, 1, pad, D), x.dtype)
    lo = jnp.concatenate([zpad, xr[:, :-1, t_tile - pad:, :]], axis=1)   # rows t*Tt-pad .. t*Tt-1
    hi = jnp.concatenate([xr[:, 1:, :pad, :], zpad], axis=1)             # rows (t+1)*Tt .. +pad-1
    halo = jnp.concatenate([lo, hi], axis=2)                             # (B, n_t, 2*pad, D)

    def full_spec(arr):
        nd = arr.ndim
        return pl.BlockSpec(arr.shape, lambda *_: (0,) * nd)

    kernel = functools.partial(_conv_module_kernel, kernel_size=K,
                               halo_off=Hp, seq_len=T)

    # ---- scoped-VMEM budget from the chosen tile (no 32 MiB floor; <= 48 MiB,
    #      safe on v7x's 64 MiB per-TensorCore VMEM) ----------------------------
    param_bytes = sum(int(p.size) * p.dtype.itemsize for p in param_list)
    act_bytes = 4 * (
        2 * (t_tile * D + 2 * pad * D)   # double-buffered x tile + halo rows
        + 2 * t_tile * E                 # double-buffered output tile
        + EXT * (D + E)                  # xext + gext scratch
        + EXT * 2 * E                    # fused-GLU intermediate h
        + 10 * EXT * E                   # other live f32 intermediates
    )
    vmem_limit = int(min(max((act_bytes + 2 * param_bytes) * 3 // 2,
                             8 * 1024 * 1024),
                         48 * 1024 * 1024))

    out = pl.pallas_call(
        kernel,
        out_shape=jax.ShapeDtypeStruct((B, T_pad, E), out_dtype),
        grid_spec=pltpu.PrefetchScalarGridSpec(
            num_scalar_prefetch=0,
            grid=(B, n_t),
            in_specs=[
                pl.BlockSpec((1, t_tile, D), lambda b, t: (b, t, 0)),
                pl.BlockSpec((1, 1, 2 * pad, D), lambda b, t: (b, t, 0, 0)),
            ] + [full_spec(p) for p in param_list],
            out_specs=pl.BlockSpec((1, t_tile, E), lambda b, t: (b, t, 0)),
            scratch_shapes=[
                pltpu.VMEM((EXT, D), jnp.float32),
                pltpu.VMEM((EXT, E), jnp.float32),
            ],
        ),
        compiler_params=pltpu.CompilerParams(
            dimension_semantics=("parallel", "parallel"),
            vmem_limit_bytes=vmem_limit,
        ),
    )(x_p, halo, *param_list)

    return out if T_pad == T else out[:, :T, :]


def make_params(key, dim_model, dim_expand, kernel_size):
    """Deterministic synthetic parameters (canonical f32 "module" weights).

    Weight layouts (vs PyTorch):
      pw1_w  (D, 2E)  == conv1.weight[:, :, 0].T
      dw_w   (K, E)   == dwconv.weight[:, 0, :].T
      pw2_w  (E, E)   == conv2.weight[:, :, 0].T
    """
    D, E, K = dim_model, dim_expand, kernel_size
    ks = jax.random.split(key, 8)
    f32 = jnp.float32
    return {
        "ln1_gamma": jnp.ones((1, D), f32),
        "ln1_beta":  jnp.zeros((1, D), f32),
        "pw1_w": 0.1 * jax.random.normal(ks[0], (D, 2 * E), f32),
        "pw1_b": 0.01 * jax.random.normal(ks[1], (1, 2 * E), f32),
        "dw_w": 0.1 * jax.random.normal(ks[2], (K, E), f32),
        "dw_b": 0.01 * jax.random.normal(ks[3], (1, E), f32),
        "bn_gamma": jnp.ones((1, E), f32),
        "bn_beta":  jnp.zeros((1, E), f32),
        "bn_mean": 0.05 * jax.random.normal(ks[4], (1, E), f32),
        "bn_var":  jnp.ones((1, E), f32) + 0.1 * jax.random.uniform(ks[5], (1, E), f32),
        "pw2_w": 0.1 * jax.random.normal(ks[6], (E, E), f32),
        "pw2_b": 0.01 * jax.random.normal(ks[7], (1, E), f32),
        "ln2_gamma": jnp.ones((1, E), f32),
        "ln2_beta":  jnp.zeros((1, E), f32),
    }


def _reference_forward(x, p, kernel_size):
    """Pure-JAX reference with the module's semantics (matmuls use the same
    bf16-operand / f32-accumulate precision choice as the kernel)."""
    E = p["ln2_gamma"].shape[-1]
    K = kernel_size
    pad = (K - 1) // 2
    mu = jnp.mean(x, -1, keepdims=True)
    var = jnp.mean((x - mu) ** 2, -1, keepdims=True)
    xn = (x - mu) / jnp.sqrt(var + 1e-6) * p["ln1_gamma"] + p["ln1_beta"]
    h = jnp.dot(xn.astype(jnp.bfloat16), p["pw1_w"].astype(jnp.bfloat16),
                preferred_element_type=jnp.float32) + p["pw1_b"]
    g = h[..., :E] * jax.nn.sigmoid(h[..., E:])
    gp = jnp.pad(g, ((0, 0), (pad, pad), (0, 0)))
    acc = jnp.broadcast_to(p["dw_b"], g.shape)
    for k in range(K):
        acc = acc + gp[:, k:k + g.shape[1], :] * p["dw_w"][k]
    y = (acc - p["bn_mean"]) / jnp.sqrt(p["bn_var"] + 1e-5) * p["bn_gamma"] + p["bn_beta"]
    y = y * jax.nn.sigmoid(y)
    z = jnp.dot(y.astype(jnp.bfloat16), p["pw2_w"].astype(jnp.bfloat16),
                preferred_element_type=jnp.float32) + p["pw2_b"]
    r = z + x
    mu2 = jnp.mean(r, -1, keepdims=True)
    var2 = jnp.mean((r - mu2) ** 2, -1, keepdims=True)
    return (r - mu2) / jnp.sqrt(var2 + 1e-5) * p["ln2_gamma"] + p["ln2_beta"]


if __name__ == "__main__":
    dim_model = dim_expand = 128   # lane-dense channel dim (multiple of 128)
    kernel_size = 5                # odd depthwise kernel, 'same' padding, stride=1

    key = jax.random.PRNGKey(0)
    kx, kp = jax.random.split(key)
    params = make_params(kp, dim_model, dim_expand, kernel_size)

    # Case 1: evenly tiled.  t_tile=64 -> grid=(2, 3): 6 pipeline steps,
    # exercises T tiling, halos and edge masking.
    B, T = 2, 192
    x = jax.random.normal(kx, (B, T, dim_model), jnp.float32)
    out = jax.block_until_ready(conv_module_forward(x, params, kernel_size, t_tile=64))
    ref = _reference_forward(x, params, kernel_size)
    assert out.shape == ref.shape
    err = float(jnp.max(jnp.abs(out - ref)))
    assert jnp.allclose(out, ref, atol=1e-2, rtol=1e-2), f"max abs err {err}"

    # Case 2: ragged last tile (T=200, t_tile=64 -> grid=(2, 4), masked tail).
    T2 = 200
    x2 = jax.random.normal(jax.random.PRNGKey(1), (B, T2, dim_model), jnp.float32)
    out2 = jax.block_until_ready(conv_module_forward(x2, params, kernel_size, t_tile=64))
    ref2 = _reference_forward(x2, params, kernel_size)
    assert out2.shape == ref2.shape
    err2 = float(jnp.max(jnp.abs(out2 - ref2)))
    assert jnp.allclose(out2, ref2, atol=1e-2, rtol=1e-2), f"max abs err {err2}"

    # TODO(synk): training-mode BatchNorm batch statistics, Dropout masking and
    # synaptic-noise weight perturbation are not modeled (eval-mode forward).
    print("KERNEL_OK")
</pallas_src>

<mosaic_0001>
module attributes {stable_mosaic.version = 11 : i64} {
  func.func @_conv_module_kernel(%arg0: i32, %arg1: i32, %arg2: memref<1x64x128xf32, #tpu.memory_space<vmem>>, %arg3: memref<1x1x4x128xf32, #tpu.memory_space<vmem>>, %arg4: memref<1x128xf32, #tpu.memory_space<vmem>>, %arg5: memref<1x128xf32, #tpu.memory_space<vmem>>, %arg6: memref<128x256xbf16, #tpu.memory_space<vmem>>, %arg7: memref<1x256xf32, #tpu.memory_space<vmem>>, %arg8: memref<5x128xf32, #tpu.memory_space<vmem>>, %arg9: memref<1x128xf32, #tpu.memory_space<vmem>>, %arg10: memref<128x128xbf16, #tpu.memory_space<vmem>>, %arg11: memref<1x128xf32, #tpu.memory_space<vmem>>, %arg12: memref<1x128xf32, #tpu.memory_space<vmem>>, %arg13: memref<1x128xf32, #tpu.memory_space<vmem>>, %arg14: memref<1x64x128xf32, #tpu.memory_space<vmem>>, %arg15: memref<80x128xf32, #tpu.memory_space<vmem>>, %arg16: memref<80x128xf32, #tpu.memory_space<vmem>>) attributes {dimension_semantics = [#tpu.dimension_semantics<parallel>, #tpu.dimension_semantics<parallel>], iteration_bounds = array<i64: 2, 3>, scalar_prefetch = 0 : i64, scratch_operands = 2 : i64, tpu.core_type = #tpu.core_type<tc>, window_params = [{transform_indices = @transform_0, window_bounds = array<i64: 1, 64, 128>}, {transform_indices = @transform_1, window_bounds = array<i64: 1, 1, 4, 128>}, {pipeline_mode = #tpu.pipeline_mode<synchronous>, transform_indices = @transform_2, window_bounds = array<i64: 1, 128>}, {pipeline_mode = #tpu.pipeline_mode<synchronous>, transform_indices = @transform_3, window_bounds = array<i64: 1, 128>}, {pipeline_mode = #tpu.pipeline_mode<synchronous>, transform_indices = @transform_4, window_bounds = array<i64: 128, 256>}, {pipeline_mode = #tpu.pipeline_mode<synchronous>, transform_indices = @transform_5, window_bounds = array<i64: 1, 256>}, {pipeline_mode = #tpu.pipeline_mode<synchronous>, transform_indices = @transform_6, window_bounds = array<i64: 5, 128>}, {pipeline_mode = #tpu.pipeline_mode<synchronous>, transform_indices = @transform_7, window_bounds = array<i64: 1, 128>}, {pipeline_mode = #tpu.pipeline_mode<synchronous>, transform_indices = @transform_8, window_bounds = array<i64: 128, 128>}, {pipeline_mode = #tpu.pipeline_mode<synchronous>, transform_indices = @transform_9, window_bounds = array<i64: 1, 128>}, {pipeline_mode = #tpu.pipeline_mode<synchronous>, transform_indices = @transform_10, window_bounds = array<i64: 1, 128>}, {pipeline_mode = #tpu.pipeline_mode<synchronous>, transform_indices = @transform_11, window_bounds = array<i64: 1, 128>}, {transform_indices = @transform_12, window_bounds = array<i64: 1, 64, 128>}]} {
    %cst = arith.constant 0.000000e+00 : f32
    %0 = vector.broadcast %cst : f32 to vector<6x128xf32>
    %c0 = arith.constant 0 : index
    %c0_0 = arith.constant 0 : index
    %1 = vector.load %arg15[%c0, %c0_0] : memref<80x128xf32, #tpu.memory_space<vmem>>, vector<6x128xf32>
    tpu.vector_store %arg15[%c0, %c0_0], %0 {strides = array<i32>} : memref<80x128xf32, #tpu.memory_space<vmem>>, vector<6x128xf32>,
    %c74 = arith.constant 74 : index
    %c0_1 = arith.constant 0 : index
    %2 = vector.load %arg15[%c74, %c0_1] : memref<80x128xf32, #tpu.memory_space<vmem>>, vector<6x128xf32>
    tpu.vector_store %arg15[%c74, %c0_1], %0 {strides = array<i32>} : memref<80x128xf32, #tpu.memory_space<vmem>>, vector<6x128xf32>,
    %c0_2 = arith.constant 0 : index
    %c0_3 = arith.constant 0 : index
    %c0_4 = arith.constant 0 : index
    %c0_5 = arith.constant 0 : index
    %3 = vector.load %arg3[%c0_2, %c0_3, %c0_4, %c0_5] : memref<1x1x4x128xf32, #tpu.memory_space<vmem>>, vector<1x1x4x128xf32>
    %4 = vector.shape_cast %3 : vector<1x1x4x128xf32> to vector<4x128xf32>
    %5 = vector.extract_strided_slice %4 {offsets = [0, 0], sizes = [2, 128], strides = [1, 1]} : vector<4x128xf32> to vector<2x128xf32>
    %c6 = arith.constant 6 : index
    %c0_6 = arith.constant 0 : index
    %6 = vector.load %arg15[%c6, %c0_6] : memref<80x128xf32, #tpu.memory_space<vmem>>, vector<2x128xf32>
    tpu.vector_store %arg15[%c6, %c0_6], %5 {strides = array<i32>} : memref<80x128xf32, #tpu.memory_space<vmem>>, vector<2x128xf32>,
    %c0_7 = arith.constant 0 : index
    %c0_8 = arith.constant 0 : index
    %c0_9 = arith.constant 0 : index
    %7 = vector.load %arg2[%c0_7, %c0_8, %c0_9] : memref<1x64x128xf32, #tpu.memory_space<vmem>>, vector<1x64x128xf32>
    %8 = vector.shape_cast %7 : vector<1x64x128xf32> to vector<64x128xf32>
    %c8 = arith.constant 8 : index
    %c0_10 = arith.constant 0 : index
    %9 = vector.load %arg15[%c8, %c0_10] : memref<80x128xf32, #tpu.memory_space<vmem>>, vector<64x128xf32>
    tpu.vector_store %arg15[%c8, %c0_10], %8 {strides = array<i32>} : memref<80x128xf32, #tpu.memory_space<vmem>>, vector<64x128xf32>,
    %10 = vector.extract_strided_slice %4 {offsets = [2, 0], sizes = [2, 128], strides = [1, 1]} : vector<4x128xf32> to vector<2x128xf32>
    %c72 = arith.constant 72 : index
    %c0_11 = arith.constant 0 : index
    %11 = vector.load %arg15[%c72, %c0_11] : memref<80x128xf32, #tpu.memory_space<vmem>>, vector<2x128xf32>
    tpu.vector_store %arg15[%c72, %c0_11], %10 {strides = array<i32>} : memref<80x128xf32, #tpu.memory_space<vmem>>, vector<2x128xf32>,
    %c0_12 = arith.constant 0 : index
    %c0_13 = arith.constant 0 : index
    %12 = vector.load %arg15[%c0_12, %c0_13] : memref<80x128xf32, #tpu.memory_space<vmem>>, vector<80x128xf32>
    %cst_14 = arith.constant dense<0.000000e+00> : vector<80xf32>
    %13 = vector.multi_reduction <add>, %12, %cst_14 [1] : vector<80x128xf32> to vector<80xf32>
    %14 = vector.shape_cast %13 : vector<80xf32> to vector<80x1xf32>
    %cst_15 = arith.constant 1.280000e+02 : f32
    %15 = vector.broadcast %cst_15 : f32 to vector<80x1xf32>
    %16 = arith.divf %14, %15 : vector<80x1xf32>
    %17 = vector.broadcast %16 : vector<80x1xf32> to vector<80x128xf32>
    %18 = arith.subf %12, %17 : vector<80x128xf32>
    %19 = arith.mulf %18, %18 : vector<80x128xf32>
    %cst_16 = arith.constant dense<0.000000e+00> : vector<80xf32>
    %20 = vector.multi_reduction <add>, %19, %cst_16 [1] : vector<80x128xf32> to vector<80xf32>
    %21 = vector.shape_cast %20 : vector<80xf32> to vector<80x1xf32>
    %cst_17 = arith.constant 1.280000e+02 : f32
    %22 = vector.broadcast %cst_17 : f32 to vector<80x1xf32>
    %23 = arith.divf %21, %22 : vector<80x1xf32>
    %24 = vector.broadcast %16 : vector<80x1xf32> to vector<80x128xf32>
    %25 = arith.subf %12, %24 : vector<80x128xf32>
    %cst_18 = arith.constant 9.99999997E-7 : f32
    %26 = vector.broadcast %cst_18 : f32 to vector<80x1xf32>
    %27 = arith.addf %23, %26 : vector<80x1xf32>
    %28 = math.rsqrt %27 : vector<80x1xf32>
    %29 = vector.broadcast %28 : vector<80x1xf32> to vector<80x128xf32>
    %30 = arith.mulf %25, %29 : vector<80x128xf32>
    %c0_19 = arith.constant 0 : index
    %c0_20 = arith.constant 0 : index
    %31 = vector.load %arg4[%c0_19, %c0_20] : memref<1x128xf32, #tpu.memory_space<vmem>>, vector<1x128xf32>
    %32 = vector.broadcast %31 : vector<1x128xf32> to vector<80x128xf32>
    %33 = arith.mulf %30, %32 : vector<80x128xf32>
    %c0_21 = arith.constant 0 : index
    %c0_22 = arith.constant 0 : index
    %34 = vector.load %arg5[%c0_21, %c0_22] : memref<1x128xf32, #tpu.memory_space<vmem>>, vector<1x128xf32>
    %35 = vector.broadcast %34 : vector<1x128xf32> to vector<80x128xf32>
    %36 = arith.addf %33, %35 : vector<80x128xf32>
    %37 = arith.truncf %36 : vector<80x128xf32> to vector<80x128xbf16>
    %c0_23 = arith.constant 0 : index
    %c0_24 = arith.constant 0 : index
    %38 = vector.load %arg6[%c0_23, %c0_24] : memref<128x256xbf16, #tpu.memory_space<vmem>>, vector<128x256xbf16>
    %cst_25 = arith.constant dense<0.000000e+00> : vector<80x256xf32>
    %39 = tpu.matmul %37, %38, %cst_25 {dimension_numbers = #tpu.dot_dimension_numbers<[1], [0], [0], [1], [0, 0, 1, 1], [], []>} : vector<80x128xbf16>, vector<128x256xbf16>, vector<80x256xf32> -> vector<80x256xf32>
    %c0_26 = arith.constant 0 : index
    %c0_27 = arith.constant 0 : index
    %40 = vector.load %arg7[%c0_26, %c0_27] : memref<1x256xf32, #tpu.memory_space<vmem>>, vector<1x256xf32>
    %41 = vector.broadcast %40 : vector<1x256xf32> to vector<80x256xf32>
    %42 = arith.addf %39, %41 : vector<80x256xf32>
    %43 = vector.extract_strided_slice %42 {offsets = [0, 0], sizes = [80, 128], strides = [1, 1]} : vector<80x256xf32> to vector<80x128xf32>
    %44 = vector.extract_strided_slice %42 {offsets = [0, 128], sizes = [80, 128], strides = [1, 1]} : vector<80x256xf32> to vector<80x128xf32>
    %45 = arith.negf %44 : vector<80x128xf32>
    %46 = math.exp %45 : vector<80x128xf32>
    %cst_28 = arith.constant 1.000000e+00 : f32
    %47 = vector.broadcast %cst_28 : f32 to vector<80x128xf32>
    %48 = arith.addf %47, %46 : vector<80x128xf32>
    %49 = arith.divf %47, %48 : vector<80x128xf32>
    %50 = arith.mulf %43, %49 : vector<80x128xf32>
    %51 = tpu.iota {dimensions = array<i32: 0>} : vector<80x128xi32>
    %c64_i32 = arith.constant 64 : i32
    %52 = arith.muli %arg1, %c64_i32 : i32
    %53 = vector.broadcast %52 : i32 to vector<80x128xi32>
    %54 = arith.addi %53, %51 : vector<80x128xi32>
    %c8_i32 = arith.constant 8 : i32
    %55 = vector.broadcast %c8_i32 : i32 to vector<80x128xi32>
    %56 = arith.subi %54, %55 : vector<80x128xi32>
    %c0_i32 = arith.constant 0 : i32
    %57 = vector.broadcast %c0_i32 : i32 to vector<80x128xi32>
    %58 = arith.cmpi sge, %56, %57 : vector<80x128xi32>
    %c192_i32 = arith.constant 192 : i32
    %59 = vector.broadcast %c192_i32 : i32 to vector<80x128xi32>
    %60 = arith.cmpi slt, %56, %59 : vector<80x128xi32>
    %61 = arith.andi %58, %60 : vector<80x128xi1>
    %cst_29 = arith.constant 0.000000e+00 : f32
    %62 = vector.broadcast %cst_29 : f32 to vector<80x128xf32>
    %63 = arith.select %61, %50, %62 : vector<80x128xi1>, vector<80x128xf32>
    %c0_30 = arith.constant 0 : index
    %c0_31 = arith.constant 0 : index
    %64 = vector.load %arg16[%c0_30, %c0_31] : memref<80x128xf32, #tpu.memory_space<vmem>>, vector<80x128xf32>
    tpu.vector_store %arg16[%c0_30, %c0_31], %63 {strides = array<i32>} : memref<80x128xf32, #tpu.memory_space<vmem>>, vector<80x128xf32>,
    %c6_32 = arith.constant 6 : index
    %c0_33 = arith.constant 0 : index
    %65 = vector.load %arg16[%c6_32, %c0_33] : memref<80x128xf32, #tpu.memory_space<vmem>>, vector<64x128xf32>
    %c0_34 = arith.constant 0 : index
    %c0_35 = arith.constant 0 : index
    %66 = vector.load %arg8[%c0_34, %c0_35] : memref<5x128xf32, #tpu.memory_space<vmem>>, vector<1x128xf32>
    %67 = vector.broadcast %66 : vector<1x128xf32> to vector<64x128xf32>
    %68 = arith.mulf %65, %67 : vector<64x128xf32>
    %c7 = arith.constant 7 : index
    %c0_36 = arith.constant 0 : index
    %69 = vector.load %arg16[%c7, %c0_36] : memref<80x128xf32, #tpu.memory_space<vmem>>, vector<64x128xf32>
    %c1 = arith.constant 1 : index
    %c0_37 = arith.constant 0 : index
    %70 = vector.load %arg8[%c1, %c0_37] : memref<5x128xf32, #tpu.memory_space<vmem>>, vector<1x128xf32>
    %71 = vector.broadcast %70 : vector<1x128xf32> to vector<64x128xf32>
    %72 = arith.mulf %69, %71 : vector<64x128xf32>
    %73 = arith.addf %68, %72 : vector<64x128xf32>
    %c8_38 = arith.constant 8 : index
    %c0_39 = arith.constant 0 : index
    %74 = vector.load %arg16[%c8_38, %c0_39] : memref<80x128xf32, #tpu.memory_space<vmem>>, vector<64x128xf32>
    %c2 = arith.constant 2 : index
    %c0_40 = arith.constant 0 : index
    %75 = vector.load %arg8[%c2, %c0_40] : memref<5x128xf32, #tpu.memory_space<vmem>>, vector<1x128xf32>
    %76 = vector.broadcast %75 : vector<1x128xf32> to vector<64x128xf32>
    %77 = arith.mulf %74, %76 : vector<64x128xf32>
    %78 = arith.addf %73, %77 : vector<64x128xf32>
    %c9 = arith.constant 9 : index
    %c0_41 = arith.constant 0 : index
    %79 = vector.load %arg16[%c9, %c0_41] : memref<80x128xf32, #tpu.memory_space<vmem>>, vector<64x128xf32>
    %c3 = arith.constant 3 : index
    %c0_42 = arith.constant 0 : index
    %80 = vector.load %arg8[%c3, %c0_42] : memref<5x128xf32, #tpu.memory_space<vmem>>, vector<1x128xf32>
    %81 = vector.broadcast %80 : vector<1x128xf32> to vector<64x128xf32>
    %82 = arith.mulf %79, %81 : vector<64x128xf32>
    %83 = arith.addf %78, %82 : vector<64x128xf32>
    %c10 = arith.constant 10 : index
    %c0_43 = arith.constant 0 : index
    %84 = vector.load %arg16[%c10, %c0_43] : memref<80x128xf32, #tpu.memory_space<vmem>>, vector<64x128xf32>
    %c4 = arith.constant 4 : index
    %c0_44 = arith.constant 0 : index
    %85 = vector.load %arg8[%c4, %c0_44] : memref<5x128xf32, #tpu.memory_space<vmem>>, vector<1x128xf32>
    %86 = vector.broadcast %85 : vector<1x128xf32> to vector<64x128xf32>
    %87 = arith.mulf %84, %86 : vector<64x128xf32>
    %88 = arith.addf %83, %87 : vector<64x128xf32>
    %c0_45 = arith.constant 0 : index
    %c0_46 = arith.constant 0 : index
    %89 = vector.load %arg9[%c0_45, %c0_46] : memref<1x128xf32, #tpu.memory_space<vmem>>, vector<1x128xf32>
    %90 = vector.broadcast %89 : vector<1x128xf32> to vector<64x128xf32>
    %91 = arith.addf %88, %90 : vector<64x128xf32>
    %92 = arith.negf %91 : vector<64x128xf32>
    %93 = math.exp %92 : vector<64x128xf32>
    %cst_47 = arith.constant 1.000000e+00 : f32
    %94 = vector.broadcast %cst_47 : f32 to vector<64x128xf32>
    %95 = arith.addf %94, %93 : vector<64x128xf32>
    %96 = arith.divf %94, %95 : vector<64x128xf32>
    %97 = arith.mulf %91, %96 : vector<64x128xf32>
    %98 = arith.truncf %97 : vector<64x128xf32> to vector<64x128xbf16>
    %c0_48 = arith.constant 0 : index
    %c0_49 = arith.constant 0 : index
    %99 = vector.load %arg10[%c0_48, %c0_49] : memref<128x128xbf16, #tpu.memory_space<vmem>>, vector<128x128xbf16>
    %cst_50 = arith.constant dense<0.000000e+00> : vector<64x128xf32>
    %100 = tpu.matmul %98, %99, %cst_50 {dimension_numbers = #tpu.dot_dimension_numbers<[1], [0], [0], [1], [0, 0, 1, 1], [], []>} : vector<64x128xbf16>, vector<128x128xbf16>, vector<64x128xf32> -> vector<64x128xf32>
    %c0_51 = arith.constant 0 : index
    %c0_52 = arith.constant 0 : index
    %101 = vector.load %arg11[%c0_51, %c0_52] : memref<1x128xf32, #tpu.memory_space<vmem>>, vector<1x128xf32>
    %102 = vector.broadcast %101 : vector<1x128xf32> to vector<64x128xf32>
    %103 = arith.addf %100, %102 : vector<64x128xf32>
    %c0_53 = arith.constant 0 : index
    %c0_54 = arith.constant 0 : index
    %c0_55 = arith.constant 0 : index
    %104 = vector.load %arg2[%c0_53, %c0_54, %c0_55] : memref<1x64x128xf32, #tpu.memory_space<vmem>>, vector<1x64x128xf32>
    %105 = vector.shape_cast %104 : vector<1x64x128xf32> to vector<64x128xf32>
    %106 = arith.addf %103, %105 : vector<64x128xf32>
    %cst_56 = arith.constant dense<0.000000e+00> : vector<64xf32>
    %107 = vector.multi_reduction <add>, %106, %cst_56 [1] : vector<64x128xf32> to vector<64xf32>
    %108 = vector.shape_cast %107 : vector<64xf32> to vector<64x1xf32>
    %cst_57 = arith.constant 1.280000e+02 : f32
    %109 = vector.broadcast %cst_57 : f32 to vector<64x1xf32>
    %110 = arith.divf %108, %109 : vector<64x1xf32>
    %111 = vector.broadcast %110 : vector<64x1xf32> to vector<64x128xf32>
    %112 = arith.subf %106, %111 : vector<64x128xf32>
    %113 = arith.mulf %112, %112 : vector<64x128xf32>
    %cst_58 = arith.constant dense<0.000000e+00> : vector<64xf32>
    %114 = vector.multi_reduction <add>, %113, %cst_58 [1] : vector<64x128xf32> to vector<64xf32>
    %115 = vector.shape_cast %114 : vector<64xf32> to vector<64x1xf32>
    %cst_59 = arith.constant 1.280000e+02 : f32
    %116 = vector.broadcast %cst_59 : f32 to vector<64x1xf32>
    %117 = arith.divf %115, %116 : vector<64x1xf32>
    %118 = vector.broadcast %110 : vector<64x1xf32> to vector<64x128xf32>
    %119 = arith.subf %106, %118 : vector<64x128xf32>
    %cst_60 = arith.constant 9.99999974E-6 : f32
    %120 = vector.broadcast %cst_60 : f32 to vector<64x1xf32>
    %121 = arith.addf %117, %120 : vector<64x1xf32>
    %122 = math.rsqrt %121 : vector<64x1xf32>
    %123 = vector.broadcast %122 : vector<64x1xf32> to vector<64x128xf32>
    %124 = arith.mulf %119, %123 : vector<64x128xf32>
    %c0_61 = arith.constant 0 : index
    %c0_62 = arith.constant 0 : index
    %125 = vector.load %arg12[%c0_61, %c0_62] : memref<1x128xf32, #tpu.memory_space<vmem>>, vector<1x128xf32>
    %126 = vector.broadcast %125 : vector<1x128xf32> to vector<64x128xf32>
    %127 = arith.mulf %124, %126 : vector<64x128xf32>
    %c0_63 = arith.constant 0 : index
    %c0_64 = arith.constant 0 : index
    %128 = vector.load %arg13[%c0_63, %c0_64] : memref<1x128xf32, #tpu.memory_space<vmem>>, vector<1x128xf32>
    %129 = vector.broadcast %128 : vector<1x128xf32> to vector<64x128xf32>
    %130 = arith.addf %127, %129 : vector<64x128xf32>
    %c0_65 = arith.constant 0 : index
    %c0_66 = arith.constant 0 : index
    %c0_67 = arith.constant 0 : index
    %131 = vector.load %arg14[%c0_65, %c0_66, %c0_67] : memref<1x64x128xf32, #tpu.memory_space<vmem>>, vector<1x64x128xf32>
    %132 = vector.shape_cast %131 : vector<1x64x128xf32> to vector<64x128xf32>
    %133 = vector.shape_cast %130 : vector<64x128xf32> to vector<1x64x128xf32>
    tpu.vector_store %arg14[%c0_65, %c0_66, %c0_67], %133 {strides = array<i32>} : memref<1x64x128xf32, #tpu.memory_space<vmem>>, vector<1x64x128xf32>,
    return
  }
  func.func @transform_0(%arg0: i32, %arg1: i32) -> (i32, i32, i32) {
    %c0_i32 = arith.constant 0 : i32
    %c0_i32_0 = arith.constant 0 : i32
    return %arg0, %arg1, %c0_i32 : i32, i32, i32
  }
  func.func @transform_1(%arg0: i32, %arg1: i32) -> (i32, i32, i32, i32) {
    %c0_i32 = arith.constant 0 : i32
    %c0_i32_0 = arith.constant 0 : i32
    %c0_i32_1 = arith.constant 0 : i32
    return %arg0, %arg1, %c0_i32, %c0_i32_0 : i32, i32, i32, i32
  }
  func.func @transform_2(%arg0: i32, %arg1: i32) -> (i32, i32) {
    %c0_i32 = arith.constant 0 : i32
    %c0_i32_0 = arith.constant 0 : i32
    %c0_i32_1 = arith.constant 0 : i32
    return %c0_i32, %c0_i32_0 : i32, i32
  }
  func.func @transform_3(%arg0: i32, %arg1: i32) -> (i32, i32) {
    %c0_i32 = arith.constant 0 : i32
    %c0_i32_0 = arith.constant 0 : i32
    %c0_i32_1 = arith.constant 0 : i32
    return %c0_i32, %c0_i32_0 : i32, i32
  }
  func.func @transform_4(%arg0: i32, %arg1: i32) -> (i32, i32) {
    %c0_i32 = arith.constant 0 : i32
    %c0_i32_0 = arith.constant 0 : i32
    %c0_i32_1 = arith.constant 0 : i32
    return %c0_i32, %c0_i32_0 : i32, i32
  }
  func.func @transform_5(%arg0: i32, %arg1: i32) -> (i32, i32) {
    %c0_i32 = arith.constant 0 : i32
    %c0_i32_0 = arith.constant 0 : i32
    %c0_i32_1 = arith.constant 0 : i32
    return %c0_i32, %c0_i32_0 : i32, i32
  }
  func.func @transform_6(%arg0: i32, %arg1: i32) -> (i32, i32) {
    %c0_i32 = arith.constant 0 : i32
    %c0_i32_0 = arith.constant 0 : i32
    %c0_i32_1 = arith.constant 0 : i32
    return %c0_i32, %c0_i32_0 : i32, i32
  }
  func.func @transform_7(%arg0: i32, %arg1: i32) -> (i32, i32) {
    %c0_i32 = arith.constant 0 : i32
    %c0_i32_0 = arith.constant 0 : i32
    %c0_i32_1 = arith.constant 0 : i32
    return %c0_i32, %c0_i32_0 : i32, i32
  }
  func.func @transform_8(%arg0: i32, %arg1: i32) -> (i32, i32) {
    %c0_i32 = arith.constant 0 : i32
    %c0_i32_0 = arith.constant 0 : i32
    %c0_i32_1 = arith.constant 0 : i32
    return %c0_i32, %c0_i32_0 : i32, i32
  }
  func.func @transform_9(%arg0: i32, %arg1: i32) -> (i32, i32) {
    %c0_i32 = arith.constant 0 : i32
    %c0_i32_0 = arith.constant 0 : i32
    %c0_i32_1 = arith.constant 0 : i32
    return %c0_i32, %c0_i32_0 : i32, i32
  }
  func.func @transform_10(%arg0: i32, %arg1: i32) -> (i32, i32) {
    %c0_i32 = arith.constant 0 : i32
    %c0_i32_0 = arith.constant 0 : i32
    %c0_i32_1 = arith.constant 0 : i32
    return %c0_i32, %c0_i32_0 : i32, i32
  }
  func.func @transform_11(%arg0: i32, %arg1: i32) -> (i32, i32) {
    %c0_i32 = arith.constant 0 : i32
    %c0_i32_0 = arith.constant 0 : i32
    %c0_i32_1 = arith.constant 0 : i32
    return %c0_i32, %c0_i32_0 : i32, i32
  }
  func.func @transform_12(%arg0: i32, %arg1: i32) -> (i32, i32, i32) {
    %c0_i32 = arith.constant 0 : i32
    %c0_i32_0 = arith.constant 0 : i32
    return %arg0, %arg1, %c0_i32 : i32, i32, i32
  }
}

</mosaic_0001>

<bundles_post_ra>
// kernel: tpu_custom_call.1
= control target key start
LH: loop header
LB: loop body
LE: loop exit
PB: predicated region body
PF: predicated region fallthrough
CT: control target
= control target key end

     0   :  { %s3096_s0 = inlined_call_operand.hbm [shape: f32[2,192,128], index: 0, kind: input, shape index: {}]   ;;  %s3097_s1 = inlined_call_operand.hbm [shape: f32[2,3,4,128], index: 1, kind: input, shape index: {}]   ;;  %s3098_s2 = inlined_call_operand.vmem [shape: f32[1,128], index: 2, kind: input, shape index: {}]   ;;  %s3099_s3 = inlined_call_operand.vmem [shape: f32[1,128], index: 3, kind: input, shape index: {}]   ;;  %s3100_s4 = inlined_call_operand.hbm [shape: bf16[128,256], index: 4, kind: input, shape index: {}]   ;;  %s3101_s5 = inlined_call_operand.vmem [shape: f32[1,256], index: 5, kind: input, shape index: {}]   ;;  %s3102_s6 = inlined_call_operand.vmem [shape: f32[5,128], index: 6, kind: input, shape index: {}]   ;;  %s3103_s7 = inlined_call_operand.vmem [shape: f32[1,128], index: 7, kind: input, shape index: {}]   ;;  %s3104_s8 = inlined_call_operand.hbm [shape: bf16[128,128], index: 8, kind: input, shape index: {}]   ;;  %s3105_s9 = inlined_call_operand.vmem [shape: f32[1,128], index: 9, kind: input, shape index: {}]   ;;  %s3106_s10 = inlined_call_operand.vmem [shape: f32[1,128], index: 10, kind: input, shape index: {}]   ;;  %s3107_s11 = inlined_call_operand.vmem [shape: f32[1,128], index: 11, kind: input, shape index: {}]   ;;  %s3108_s12 = inlined_call_operand.hbm [shape: f32[2,192,128], index: 12, kind: output, shape index: {}]  }
   0x1   :  { %3123 = sst [smem:[#allocation26_spill]] %s3096_s0 }
   0x2   :  { %3124 = sst [smem:[#allocation27_spill]] %s3100_s4 }
   0x3   :  { %3125 = sst [smem:[#allocation28_spill]] %s3102_s6 }
   0x4   :  { %3126 = sst [smem:[#allocation29_spill]] %s3103_s7 }
   0x5   :  { %3127 = sst [smem:[#allocation30_spill]] %s3104_s8 }
   0x6   :  { %3128 = sst [smem:[#allocation31_spill]] %s3105_s9 }
   0x7   :  { %3129 = sst [smem:[#allocation32_spill]] %s3106_s10 }
   0x8   :  { %3130 = sst [smem:[#allocation33_spill]] %s3107_s11 }
   0x9   :  { %3131 = sst [smem:[#allocation34_spill]] %s3108_s12 }
   0xa   :  { %17 = vsyncpa [#allocation5], 0 }
   0xb   :  { %19 = vsyncpa [#allocation5 + $0x1], 0 }
   0xc   :  { %20 = vsyncpa [#allocation8], 0 }
   0xd   :  { %22 = vsyncpa [#allocation8 + $0x1], 0 }
   0xe   :  { %23 = vsyncpa [#allocation11], 0 }
   0xf   :  { %24 = vsyncpa [#allocation6], 0 }
  0x10   :  { %26 = vsyncpa [#allocation6 + $0x1], 0  ;;  %s2371_s21 = smov 0   ;;  %s2373_s22 = smov 0  }
  0x11   :  { %s2375_s23 = smov 0   ;;  %s2377_s24 = smov 0  }
  0x12   :  { %s2379_s25 = smov 0   ;;  %s2381_s26 = smov 0  }
  0x13   :  { %s2383_s27 = smov 0   ;;  %s2385_s28 = smov 0  }
  0x14 LB: > { %3132 = sst [smem:[#allocation18_spill]] %s2263_s21  ;;  %s2412_s29 = sadd.s32 4294967295, %s2291_s28   ;;  %s2291_s28 = sphi %s2385_s28, %s32_s28   ;;  %s2287_s27 = sphi %s2383_s27, %s3190_s27   ;;  %s2283_s26 = sphi %s2381_s26, %s3189_s26   ;;  %s2279_s25 = sphi %s2379_s25, %s3188_s25   ;;  %s2275_s24 = sphi %s2377_s24, %s3187_s24   ;;  %s2271_s23 = sphi %s2375_s23, %s3182_s23   ;;  %s2267_s22 = sphi %s2373_s22, %s3186_s22   ;;  %s2263_s21 = sphi %s2371_s21, %s3185_s21  }
  0x15   : > { %3133 = sst [smem:[#allocation19_spill]] %s2271_s23  ;;  %s1689_s30 = sadd.s32 4294967294, %s2291_s28  }
  0x16   : > { %3134 = sst [smem:[#allocation20_spill]] %s2279_s25  ;;  %p66_p0 = scmp.ne.s32.totalorder %s2267_s22, %s2263_s21 }
  0x17   : > { %p3112_p1 = scmp.eq.s32.totalorder %s2412_s29, 0  ;;  %p336_p3 = scmp.eq.s32.totalorder %s1689_s30, 5 }
  0x18   : > { %p1690_p5 = scmp.ge.s32.totalorder %s2291_s28, 1  ;;  %p343_p7 = scmp.lt.s32.totalorder %s2291_s28, 7 }
  0x19   : > { %p2421_p4 = por %p3112_p1, %p66_p0  ;;  %p2426_p6 = por %p336_p3, %p66_p0 }
  0x1a   : > { %p2431_p8 = pnand %p1690_p5, %p343_p7  ;;  %s2293_s16 = smov [#allocation9]  }
  0x1b   : > { %s3135_s13 = scalar_select %p2421_p4, 1, 0 }
  0x1c   : > { %s3136_s14 = scalar_select %p2426_p6, 1, 0 }
  0x1d   : > { %s3138_s15 = scalar_select %p2431_p8, 1, 0 }
  0x1e   : > { %3137 = sst [smem:[#allocation21_spill]] %s3136_s14  ;;  %s361_s17 = sshll.u32 %s2293_s16, 4  ;;  %s362_s17 = int_to_ptr.vmem [resolvable:$true] %s361_s17 }
  0x1f   : > { %p1827_p9 = pneg %p2431_p8  ;;  %s2294_s19 = smov [#allocation10]  }
  0x20   : > { %s383_s20 = sshll.u32 %s2294_s19, 4  ;;  %s3140_s4 = sld [smem:[#allocation27_spill]]  ;;  %s2443_s20 = int_to_ptr.vmem [resolvable:$true] %s383_s20 }
  0x21   : > { %p2439_p10 = pnand %p1827_p9, %p3112_p1 }
  0x23   : > { %p2067_p12 = pneg %p2439_p10 }
  0x26   : > { %s2065_s21 = scalar_lea.hbm %s3140_s4, 2048 }
  0x27   : > { %p2066_p11 = scmp.ne.s32.totalorder %s3140_s4, %s2065_s21  ;;  %p2072_p3 = scmp.lt.u32.totalorder %s2065_s21, %s3140_s4 }
  0x29   : > { %p2068_p13 = pnand %p2067_p12, %p2066_p11 }
  0x2b   : > { %p2069_p0 = pneg %p2068_p13 }
  0x2d   : > { %p2074_p5 = pnand %p2072_p3, %p2069_p0 }
  0x2f   : > { %2077 = shalt.err (!%p2074_p5)
}
  0x30   : > { %s2078_s19 = scalar_lea.vmem %s362_s17, 2048  ;;  %p2086_p2 = scmp.lt.s32.totalorder %s362_s17, %s362_s17 }
  0x31   : > { %p2079_p7 = scmp.ne.s32.totalorder %s362_s17, %s2078_s19  ;;  %p2087_p6 = scmp.lt.s32.totalorder %s2078_s19, %s2078_s19 }
  0x33   : > { %p2081_p9 = pnand %p2079_p7, %p2067_p12  ;;  %p2088_p4 = por %p2087_p6, %p2086_p2 }
  0x35   : > { %p2082_p1 = pneg %p2081_p9 }
  0x37   : > { %p2089_p8 = pnand %p2088_p4, %p2082_p1 }
  0x39   : > { %2092 = shalt.err (!%p2089_p8)
}
  0x3a   : > { %s3115_s12 = smov 128   ;;  %s3116_s14 = smov 8  }
  0x3b   : > { %1830 = dma.hbm_to_vmem [thread:$0]  (!%p2439_p10), %s3140_s4, 2048, %s362_s17, [#allocation8], %s3115_s12, %s3115_s12, %s3116_s14  }
  0x3c   : > { %s3141_s8 = sld [smem:[#allocation30_spill]] }
  0x42   : > { %s2093_s16 = scalar_lea.hbm %s3141_s8, 1024 }
  0x43   : > { %p2094_p1 = scmp.ne.s32.totalorder %s3141_s8, %s2093_s16  ;;  %p2100_p6 = scmp.lt.u32.totalorder %s2093_s16, %s3141_s8 }
  0x45   : > { %p2096_p2 = pnand %p2094_p1, %p2067_p12 }
  0x47   : > { %p2097_p4 = pneg %p2096_p2 }
  0x49   : > { %p2102_p8 = pnand %p2100_p6, %p2097_p4 }
  0x4b   : > { %2105 = shalt.err (!%p2102_p8)
}
  0x4c   : > { %s2106_s17 = scalar_lea.vmem %s2443_s20, 1024  ;;  %p2114_p3 = scmp.lt.s32.totalorder %s2443_s20, %s2443_s20 }
  0x4d   : > { %p2107_p11 = scmp.ne.s32.totalorder %s2443_s20, %s2106_s17  ;;  %p2115_p5 = scmp.lt.s32.totalorder %s2106_s17, %s2106_s17 }
  0x4f   : > { %p2109_p13 = pnand %p2107_p11, %p2067_p12  ;;  %p2116_p7 = por %p2115_p5, %p2114_p3 }
  0x51   : > { %p2110_p0 = pneg %p2109_p13 }
  0x53   : > { %p2117_p9 = pnand %p2116_p7, %p2110_p0 }
  0x55   : > { %2120 = shalt.err (!%p2117_p9)
}
  0x56   : > { %s2297_s7 = smov 64   ;;  %s2298_s9 = smov 4  }
  0x57   : > { %1833 = dma.hbm_to_vmem [thread:$0]  (!%p2439_p10), %s3141_s8, 1024, %s2443_s20, [#allocation11], %s2297_s7, %s2297_s7, %s2298_s9  }
  0x58   : > { %s41_s21 = sadd.s32 1, %s2283_s26  ;;  %s44_s25 = sadd.s32 1, %s2287_s27 }
  0x59   : > { %p42_p12 = scmp.ge.s32.totalorder %s41_s21, 3  ;;  %s53_s30 = sadd.s32 1, %s2271_s23 }
  0x5a   : > { %p60_p1 = scmp.ne.s32.totalorder %s2271_s23, %s2267_s22  ;;  %p61_p2 = scmp.eq.s32.totalorder %s2291_s28, 0 }
  0x5b   : > { %s3192_s21 = smov (%p42_p12, %s41_s21), 0  ;;  %s3194_s25 = smov (!%p42_p12, %s44_s25), %s2287_s27 }
  0x5c   : > { %3142 = sst [smem:[#allocation22_spill]] %s3192_s21  ;;  %s49_s16 = ssub.s32 %s2283_s26, %s3192_s21 }
  0x5d   : > { %p2506_p4 = por %p61_p2, %p60_p1  ;;  %p46_p10 = scmp.ge.s32.totalorder %s3194_s25, 2 }
  0x5e   : > { %p3144_p6 = scmp.eq.s32.totalorder %s2412_s29, 5  ;;  %p1847_p11 = scmp.lt.s32.totalorder %s2291_s28, 6 }
  0x5f   : > { %s2518_s19 = sand.u32 1, %s2271_s23   ;;  %s3196_s25 = smov (%p46_p10, %s3194_s25), 0 }
  0x60   : > { %p2512_p8 = por %p3144_p6, %p60_p1  ;;  %3147 = sst [smem:[#allocation24_spill]] %s3196_s25 }
  0x61   : > { %s1694_s17 = sshll.u32 %s2518_s19, 6  ;;  %s48_s7 = ssub.s32 %s2287_s27, %s3196_s25 }
  0x62   : > { %s3145_s20 = scalar_select %p2512_p8, 1, 0 }
  0x63   : > { %s50_s9 = sor.u32 %s49_s16, %s48_s7  ;;  %s1695_s10 = sshll.u32 %s2283_s26, 3 }
  0x64   : > { %3146 = sst [smem:[#allocation23_spill]] %s3145_s20  ;;  %p51_p13 = scmp.eq.s32.totalorder %s50_s9, 0 }
  0x65   : > { %s1810_s11 = smul.u32 24, %s2287_s27  ;;  %s410_s12 = scalar_lea.vmem [#allocation4], %s1694_s17 }
  0x66   : > { %s419_s14 = sshll.u32 %s410_s12, 4  ;;  %p2529_p0 = pnand %p1847_p11, %p2506_p4  ;;  %s2536_s14 = int_to_ptr.vmem [resolvable:$true] %s419_s14 }
  0x67   : > { %s2534_s8 = scalar_select %p51_p13, %s2271_s23, %s53_s30  }
  0x68   : > { %s416_s21 = sadd.s32 %s1810_s11, %s1695_s10  ;;  %s3150_s0 = sld [smem:[#allocation26_spill]] }
  0x69   : > { %3149 = sst [smem:[#allocation25_spill]] %s2534_s8  ;;  %s1696_s20 = sshll.u32 %s416_s21, 7 }
  0x6a   : > { %s407_s18 = scalar_lea.sflag [#allocation5], %s2518_s19  ;;  %p2123_p5 = pneg %p2529_p0 }
  0x6e   : > { %s2541_s7 = scalar_lea.hbm %s3150_s0, %s1696_s20  ;;  %s2126_s25 = scalar_lea.hbm %s3150_s0, 6144 }
  0x6f   : > { %s2121_s17 = scalar_lea.hbm %s2541_s7, 1024  ;;  %p2127_p12 = scmp.lt.u32.totalorder %s2541_s7, %s3150_s0 }
  0x70   : > { %p2122_p3 = scmp.ne.s32.totalorder %s2541_s7, %s2121_s17  ;;  %p2128_p1 = scmp.lt.u32.totalorder %s2126_s25, %s2121_s17 }
  0x71   : > { %p2130_p4 = scmp.lt.u32.totalorder %s2121_s17, %s2541_s7 }
  0x72   : > { %p2124_p7 = pnand %p2123_p5, %p2122_p3  ;;  %p2129_p2 = por %p2128_p1, %p2127_p12 }
  0x74   : > { %p2125_p9 = pneg %p2124_p7  ;;  %p2131_p10 = por %p2130_p4, %p2129_p2 }
  0x76   : > { %p2132_p6 = pnand %p2131_p10, %p2125_p9 }
  0x78   : > { %2135 = shalt.err (!%p2132_p6)
}
  0x79   : > { %s2136_s10 = scalar_lea.vmem %s2536_s14, 1024  ;;  %s2299_s11 = smov [#allocation4]  }
  0x7a   : > { %p2137_p11 = scmp.ne.s32.totalorder %s2536_s14, %s2136_s10  ;;  %s2141_s16 = sshll.u32 %s2299_s11, 4  ;;  %s2142_s16 = int_to_ptr.vmem [resolvable:$false] %s2141_s16 }
  0x7b   : > { %s2143_s21 = scalar_lea.vmem %s2142_s16, 2048  ;;  %p2144_p7 = scmp.lt.s32.totalorder %s2536_s14, %s2142_s16 }
  0x7c   : > { %p2139_p13 = pnand %p2137_p11, %p2123_p5  ;;  %p2145_p12 = scmp.lt.s32.totalorder %s2143_s21, %s2136_s10 }
  0x7e   : > { %p2140_p3 = pneg %p2139_p13  ;;  %p2146_p1 = por %p2145_p12, %p2144_p7 }
  0x80   : > { %p2147_p2 = pnand %p2146_p1, %p2140_p3 }
  0x82   : > { %2150 = shalt.err (!%p2147_p2)
}
  0x83   : > { %s3151_s17 = smov 8   ;;  %s3152_s30 = smov 128  }
  0x84   : > { %1837 = dma.hbm_to_vmem [thread:$0]  (!%p2529_p0), %s2541_s7, 1024, %s2536_s14, %s407_s18, %s3152_s30, %s3152_s30, %s3151_s17  }
  0x85   : > { %s1697_s25 = sshll.u32 %s2518_s19, 2  ;;  %s1811_s20 = smul.u32 3, %s2287_s27 }
  0x86   : > { %s433_s9 = scalar_lea.vmem [#allocation7], %s1697_s25  ;;  %s3153_s8 = sand.u32 1, %s2291_s28  }
  0x87   : > { %s442_s10 = sshll.u32 %s433_s9, 4  ;;  %s438_s11 = sadd.s32 %s2283_s26, %s1811_s20  ;;  %s2578_s10 = int_to_ptr.vmem [resolvable:$true] %s442_s10 }
  0x88   : > { %s1698_s16 = sshll.u32 %s438_s11, 6  ;;  %s430_s23 = scalar_lea.sflag [#allocation8], %s3153_s8 }
  0x89   : > { %s440_s0 = scalar_lea.hbm %s3097_s1, %s1698_s16  ;;  %s2156_s7 = scalar_lea.hbm %s3097_s1, 384 }
  0x8a   : > { %s2151_s6 = scalar_lea.hbm %s440_s0, 64  ;;  %p2157_p6 = scmp.lt.u32.totalorder %s440_s0, %s3097_s1 }
  0x8b   : > { %p2152_p9 = scmp.ne.s32.totalorder %s440_s0, %s2151_s6  ;;  %p2158_p11 = scmp.lt.u32.totalorder %s2156_s7, %s2151_s6 }
  0x8c   : > { %p2160_p3 = scmp.lt.u32.totalorder %s2151_s6, %s440_s0 }
  0x8d   : > { %p2154_p4 = pnand %p2152_p9, %p2123_p5  ;;  %p2159_p13 = por %p2158_p11, %p2157_p6 }
  0x8f   : > { %p2155_p10 = pneg %p2154_p4  ;;  %p2161_p7 = por %p2160_p3, %p2159_p13 }
  0x91   : > { %p2162_p12 = pnand %p2161_p7, %p2155_p10 }
  0x93   : > { %2165 = shalt.err (!%p2162_p12)
}
  0x94   : > { %s2166_s8 = scalar_lea.vmem %s2578_s10, 64  ;;  %s2300_s12 = smov [#allocation7]  }
  0x95   : > { %p2167_p1 = scmp.ne.s32.totalorder %s2578_s10, %s2166_s8  ;;  %s2171_s30 = sshll.u32 %s2300_s12, 4  ;;  %s2172_s30 = int_to_ptr.vmem [resolvable:$false] %s2171_s30 }
  0x96   : > { %s2173_s25 = scalar_lea.vmem %s2172_s30, 128  ;;  %p2174_p4 = scmp.lt.s32.totalorder %s2578_s10, %s2172_s30 }
  0x97   : > { %p2169_p2 = pnand %p2167_p1, %p2123_p5  ;;  %p2175_p6 = scmp.lt.s32.totalorder %s2173_s25, %s2166_s8 }
  0x99   : > { %p2170_p9 = pneg %p2169_p2  ;;  %p2176_p11 = por %p2175_p6, %p2174_p4 }
  0x9b   : > { %p2177_p13 = pnand %p2176_p11, %p2170_p9 }
  0x9d   : > { %2180 = shalt.err (!%p2177_p13)
}
  0x9e   : > { %1840 = dma.hbm_to_vmem [thread:$0]  (!%p2529_p0), %s440_s0, 64, %s2578_s10, %s430_s23  }
  0x9f   : > { %p3154_p10 = scmp.ne.s32.totalorder %s3138_s15, 0 }
  0xa0   : > { %s2606_s6 = sand.u32 (!%p3154_p10), 1, %s2267_s22   ;;  %p3155_p5 = scmp.ne.s32.totalorder (!%p3154_p10), %s3135_s13, 0 }
  0xa1   : > { %451 = sbr.rel (%p3154_p10) target bundleno = 1381 (0x565), region = 68  ;;  %s1700_s20 = sshll.u32 (!%p3154_p10), %s2606_s6, 6 }
  0xa2   : > { %s454_s9 = scalar_lea.sflag (!%p3154_p10), [#allocation5], %s2606_s6  ;;  %s2612_s11 = scalar_lea.vmem (!%p3154_p10), [#allocation4], %s1700_s20 }
  0xa8   : > { %2242 = dma.done.wait (%p3155_p5), %s454_s9, 1024  }
  0xa9   : > { %2244 = vsyncadd (%p3155_p5), %s454_s9, 4294966272  ;;  %s462_s0 = sand.u32 1, %s2412_s29   ;;  %s1701_s4 = sshll.u32 %s2606_s6, 2 }
  0xaa   : > { %s463_s23 = scalar_lea.sflag [#allocation8], %s462_s0  ;;  %s466_s15 = scalar_lea.vmem [#allocation7], %s1701_s4 }
  0xab   : > { %2246 = dma.done.wait (%p3155_p5), %s463_s23, 64  }
  0xac   : > { %2248 = vsyncadd (%p3155_p5), %s463_s23, 4294967232  ;;  %p3156_p0 = scmp.eq.s32.totalorder %s2412_s29, 0 }
  0xae   : > { %2250 = dma.done.wait (%p3156_p0), [#allocation8], 2048   ;;  %p3157_p3 = pmov %p3156_p0 }
  0xaf   : > { %p3158_p7 = pmov %p3156_p0 }
  0xb0   : > { %2252 = vsyncadd (%p3157_p3), [#allocation8], 4294965248 }
  0xb1   : > { %2254 = dma.done.wait (%p3158_p7), [#allocation11], 1024   ;;  %p3159_p12 = pmov %p3156_p0 }
  0xb2   : > { %v2301_v0 = vmov 0.0   ;;  %v525_v1 = vld [vmem:[%s466_s15] sm:$0xf]  ;;  %v528_v2 = vld [vmem:[%s2612_s11 + $0x8] sm:$0xff]  ;;  %v529_v4 = vld [vmem:[%s2612_s11 + $0x10] sm:$0xff]  ;;  %s1733_s19 = sshll.u32 %s2275_s24, 6 }
  0xb3   : > { %2256 = vsyncadd (%p3159_p12), [#allocation11], 4294966272  ;;  %523 = vst [vmem:[#allocation2] sm:$0x3f] %v2301_v0  ;;  %v527_v3 = vld [vmem:[%s2612_s11] sm:$0xff]  ;;  %558 = vadd.xlane.f32.xlu1 %v528_v2  ;;  %v530_v5 = vld [vmem:[%s2612_s11 + $0x18] sm:$0xff] }
  0xb4   : > { %524 = vst [vmem:[#allocation2 + $0x4a] sm:$0x3f] %v2301_v0  ;;  %526 = vst [vmem:[#allocation2 + $0x6] sm:$0x3] %v525_v1  ;;  %v531_v6 = vld [vmem:[%s2612_s11 + $0x20] sm:$0xff]  ;;  %v532_v7 = vld [vmem:[%s2612_s11 + $0x28] sm:$0xff] }
  0xb5   : > { %543 = vst [vmem:[#allocation2 + $0x46] sm:$0xc] %v525_v1  ;;  %v533_v8 = vld [vmem:[%s2612_s11 + $0x30] sm:$0xff]  ;;  %v534_v9 = vld [vmem:[%s2612_s11 + $0x38] sm:$0xff]  ;;  %s3162_s17 = sld [smem:[#allocation28_spill]]  ;;  %s3167_s13 = sld [smem:[#allocation29_spill]] }
  0xb6   : > { %v1925_v12 = vld [vmem:[#allocation9 + $0x4] ss:$8 sps:$4 sm:$0xff]   ;;  %v1927_v13 = vld [vmem:[#allocation9] ss:$8 sps:$4 sm:$0xff]   ;;  %v1928_v14 = vld [vmem:[#allocation9 + $0x14] ss:$8 sps:$4 sm:$0xff]  }
  0xb7   : > { %560 = vadd.xlane.f32.xlu1 %v529_v4  ;;  %812 = vmatprep.subr.bf16.mxu0 %v1925_v12  ;;  %v1930_v53 = vld [vmem:[#allocation9 + $0x10] ss:$8 sps:$4 sm:$0xff]   ;;  %v1931_v55 = vld [vmem:[#allocation9 + $0x24] ss:$8 sps:$4 sm:$0xff]   ;;  %v1933_v57 = vld [vmem:[#allocation9 + $0x20] ss:$8 sps:$4 sm:$0xff]  }
  0xb8   : > { %813 = vmatpush1.bf16.msra.mxu0 %v1927_v13  ;;  %v1934_v58 = vld [vmem:[#allocation9 + $0x34] ss:$8 sps:$4 sm:$0xff]   ;;  %v1936_v59 = vld [vmem:[#allocation9 + $0x30] ss:$8 sps:$4 sm:$0xff]   ;;  %v1937_v60 = vld [vmem:[#allocation9 + $0x44] ss:$8 sps:$4 sm:$0xff]  }
  0xb9   : > { %814 = vmatprep.subr.bf16.mxu0 %v1928_v14  ;;  %v1939_v61 = vld [vmem:[#allocation9 + $0x40] ss:$8 sps:$4 sm:$0xff]   ;;  %v1940_v62 = vld [vmem:[#allocation9 + $0x54] ss:$8 sps:$4 sm:$0xff]   ;;  %v1942_v63 = vld [vmem:[#allocation9 + $0x50] ss:$8 sps:$4 sm:$0xff]  }
  0xba   : > { %v1943_v0 = vld [vmem:[#allocation9 + $0x64] ss:$8 sps:$4 sm:$0xff]   ;;  %v1945_v1 = vld [vmem:[#allocation9 + $0x60] ss:$8 sps:$4 sm:$0xff]   ;;  %s3172_s21 = sld [smem:[#allocation31_spill]]  ;;  %s3174_s8 = sld [smem:[#allocation33_spill]] }
  0xbb   : > { %v544_v10 = vld [vmem:[#allocation2] sm:$0xff]  ;;  %564 = vadd.xlane.f32.xlu1 %v531_v6  ;;  %s3019_s12 = scalar_lea.vmem [#allocation12], %s1700_s20  ;;  %s3175_s30 = sld [smem:[#allocation20_spill]] }
  0xbc   : > { %554 = vadd.xlane.f32.xlu0 %v544_v10  ;;  %v553_v11 = vld [vmem:[#allocation2 + $0x48] sm:$0xff]  ;;  %815 = vmatpush1.bf16.msra.mxu0 %v1930_v53  ;;  %s1770_s25 = sshll.u32 %s2275_s24, 3  ;;  %s1554_s4 = sshll.u32 %s3019_s12, 4  ;;  %s3040_s4 = int_to_ptr.vmem [resolvable:$true] %s1554_s4 }
  0xbd   : > { %816 = vmatprep.subr.bf16.mxu0 %v1931_v55  ;;  %s3177_s29 = sld [smem:[#allocation34_spill]]  ;;  %s1539_s10 = scalar_lea.sflag [#allocation6], %s2606_s6 }
  0xbe   : > { %s2181_s16 = scalar_lea.vmem %s3040_s4, 1024 }
  0xbf   : > { %568 = vadd.xlane.f32.xlu1 %v533_v8  ;;  %p2182_p1 = scmp.ne.s32.totalorder %s3040_s4, %s2181_s16 }
  0xc0   : > { %556 = vadd.xlane.f32.xlu0 %v527_v3  ;;  %817 = vmatpush1.bf16.msra.mxu0 %v1933_v57 }
  0xc1   : > { %818 = vmatprep.subr.bf16.mxu0 %v1934_v58  ;;  %s1812_s20 = smul.u32 24, %s3175_s30  ;;  %p2183_p2 = pnand %p2182_p1, %p2512_p8 }
  0xc3   : > { %572 = vadd.xlane.f32.xlu1 %v553_v11  ;;  %s1551_s9 = sadd.s32 %s1812_s20, %s1770_s25  ;;  %p2184_p9 = pneg %p2183_p2 }
  0xc4   : > { %562 = vadd.xlane.f32.xlu0 %v530_v5  ;;  %819 = vmatpush1.bf16.msra.mxu0 %v1936_v59  ;;  %s1771_s24 = sshll.u32 %s1551_s9, 7 }
  0xc5   : > { %820 = vmatprep.subr.bf16.mxu0 %v1937_v60 }
  0xc8   : > { %566 = vadd.xlane.f32.xlu0 %v532_v7  ;;  %821 = vmatpush1.bf16.msra.mxu0 %v1939_v61 }
  0xc9   : > { %822 = vmatprep.subr.bf16.mxu0 %v1940_v62 }
  0xcc   : > { %570 = vadd.xlane.f32.xlu0 %v534_v9  ;;  %823 = vmatpush1.bf16.msra.mxu0 %v1942_v63 }
  0xcd   : > { %824 = vmatprep.subr.bf16.mxu0 %v1943_v0 }
  0xd0   : > { %825 = vmatpush1.bf16.msra.mxu0 %v1945_v1 }
 0x140   : > { %v559_v15 = vpop.xlane.xlu1 %558 }
 0x141   : > { %v577_v17 = vmul.f32 0.0078125, %v559_v15 }
 0x143   : > { %v2642_v22 = vsub.f32 %v528_v2, %v577_v17  ;;  %v1946_v2 = vld [vmem:[#allocation9 + $0x74] ss:$8 sps:$4 sm:$0xff]  }
 0x144   : > { %v561_v16 = vpop.xlane.xlu1 %560  ;;  %826 = vmatprep.subr.bf16.mxu0 %v1946_v2 }
 0x145   : > { %v578_v23 = vmul.f32 0.0078125, %v561_v16  ;;  %v597_v30 = vmul.f32 %v2642_v22, %v2642_v22 }
 0x147   : > { %v2648_v29 = vsub.f32 %v529_v4, %v578_v23  ;;  %v2302_v4 = vmov 0  }
 0x148   : > { %v565_v19 = vpop.xlane.xlu1 %564  ;;  %844 = vmatprep.mubr.bf16.mxu0 %v2302_v4 }
 0x149   : > { %v555_v18 = vpop.xlane.xlu0 %554  ;;  %v580_v31 = vmul.f32 0.0078125, %v565_v19  ;;  %v598_v37 = vmul.f32 %v2648_v29, %v2648_v29 }
 0x14a   : > { %v575_v20 = vmul.f32 0.0078125, %v555_v18 }
 0x14b   : > { %v2656_v36 = vsub.f32 %v531_v6, %v580_v31 }
 0x14c   : > { %v2640_v21 = vsub.f32 %v544_v10, %v575_v20  ;;  %v569_v27 = vpop.xlane.xlu1 %568 }
 0x14d   : > { %v557_v24 = vpop.xlane.xlu0 %556  ;;  %v582_v38 = vmul.f32 0.0078125, %v569_v27  ;;  %v600_v45 = vmul.f32 %v2656_v36, %v2656_v36 }
 0x14e   : > { %v576_v25 = vmul.f32 0.0078125, %v557_v24  ;;  %v595_v26 = vmul.f32 %v2640_v21, %v2640_v21 }
 0x14f   : > { %v2664_v44 = vsub.f32 %v533_v8, %v582_v38 }
 0x150   : > { %v2646_v28 = vsub.f32 %v527_v3, %v576_v25  ;;  %605 = vadd.xlane.f32.xlu0 %v595_v26  ;;  %v573_v40 = vpop.xlane.xlu1 %572  ;;  %v1948_v3 = vld [vmem:[#allocation9 + $0x70] ss:$8 sps:$4 sm:$0xff]  }
 0x151   : > { %v563_v32 = vpop.xlane.xlu0 %562  ;;  %v584_v46 = vmul.f32 0.0078125, %v573_v40  ;;  %v602_v52 = vmul.f32 %v2664_v44, %v2664_v44  ;;  %827 = vmatpush1.bf16.msra.mxu0 %v1948_v3 }
 0x152   : > { %v579_v33 = vmul.f32 0.0078125, %v563_v32  ;;  %v596_v34 = vmul.f32 %v2646_v28, %v2646_v28  ;;  %v1705_v32 = vld [vmem:[%s3098_s2] ss:$0 sm:$0xff] }
 0x153   : > { %v2672_v51 = vsub.f32 %v553_v11, %v584_v46 }
 0x154   : > { %v2654_v35 = vsub.f32 %v530_v5, %v579_v33  ;;  %609 = vadd.xlane.f32.xlu0 %v597_v30  ;;  %607 = vadd.xlane.f32.xlu1 %v596_v34 }
 0x155   : > { %v567_v39 = vpop.xlane.xlu0 %566  ;;  %v604_v56 = vmul.f32 %v2672_v51, %v2672_v51 }
 0x156   : > { %v581_v41 = vmul.f32 0.0078125, %v567_v39  ;;  %v599_v42 = vmul.f32 %v2654_v35, %v2654_v35 }
 0x158   : > { %v2662_v43 = vsub.f32 %v532_v7, %v581_v41  ;;  %611 = vadd.xlane.f32.xlu1 %v598_v37  ;;  %613 = vadd.xlane.f32.xlu0 %v599_v42  ;;  %v1706_v41 = vld [vmem:[%s3099_s3] ss:$0 sm:$0xff] }
 0x159   : > { %v571_v47 = vpop.xlane.xlu0 %570 }
 0x15a   : > { %v583_v48 = vmul.f32 0.0078125, %v571_v47  ;;  %v601_v49 = vmul.f32 %v2662_v43, %v2662_v43 }
 0x15c   : > { %v2670_v50 = vsub.f32 %v534_v9, %v583_v48  ;;  %615 = vadd.xlane.f32.xlu1 %v600_v45  ;;  %617 = vadd.xlane.f32.xlu0 %v601_v49 }
 0x15e   : > { %v603_v54 = vmul.f32 %v2670_v50, %v2670_v50 }
 0x160   : > { %619 = vadd.xlane.f32.xlu1 %v602_v52  ;;  %621 = vadd.xlane.f32.xlu0 %v603_v54 }
 0x164   : > { %623 = vadd.xlane.f32.xlu1 %v604_v56 }
 0x1dd   : > { %v606_v5 = vpop.xlane.xlu0 %605 }
 0x1de   : > { %v625_v6 = vmul.f32 0.0078125, %v606_v5 }
 0x1e0   : > { %v635_v7 = vadd.f32 1e-06, %v625_v6 }
 0x1e1   : > { %v608_v8 = vpop.xlane.xlu1 %607  ;;  %v610_v9 = vpop.xlane.xlu0 %609 }
 0x1e2   : > { %1957 = vrsqrt.f32 %v635_v7  ;;  %v626_v10 = vmul.f32 0.0078125, %v608_v8  ;;  %v627_v11 = vmul.f32 0.0078125, %v610_v9 }
 0x1e4   : > { %v636_v12 = vadd.f32 1e-06, %v626_v10  ;;  %v637_v13 = vadd.f32 1e-06, %v627_v11 }
 0x1e5   : > { %v612_v14 = vpop.xlane.xlu1 %611  ;;  %v614_v15 = vpop.xlane.xlu0 %613 }
 0x1e6   : > { %1959 = vrsqrt.f32 %v636_v12  ;;  %v628_v16 = vmul.f32 0.0078125, %v612_v14  ;;  %v629_v18 = vmul.f32 0.0078125, %v614_v15 }
 0x1e7   : > { %1961 = vrsqrt.f32 %v637_v13 }
 0x1e8   : > { %v638_v17 = vadd.f32 1e-06, %v628_v16  ;;  %v639_v24 = vadd.f32 1e-06, %v629_v18 }
 0x1e9   : > { %v616_v19 = vpop.xlane.xlu1 %615  ;;  %v618_v26 = vpop.xlane.xlu0 %617 }
 0x1ea   : > { %1963 = vrsqrt.f32 %v638_v17  ;;  %v630_v20 = vmul.f32 0.0078125, %v616_v19  ;;  %v631_v34 = vmul.f32 0.0078125, %v618_v26  ;;  %v1954_v26 = vld [vmem:[#allocation10 + $0x28] sm:$0xff]  }
 0x1ec   : > { %v1958_v23 = vpop.eup %1957  ;;  %v640_v25 = vadd.f32 1e-06, %v630_v20  ;;  %v641_v46 = vadd.f32 1e-06, %v631_v34 }
 0x1ed   : > { %v620_v27 = vpop.xlane.xlu1 %619  ;;  %v655_v30 = vmul.f32 %v1958_v23, %v2640_v21  ;;  %v622_v47 = vpop.xlane.xlu0 %621  ;;  %v1949_v23 = vld [vmem:[#allocation10] sm:$0xff]  }
 0x1ee   : > { %1965 = vrsqrt.f32 %v640_v25  ;;  %v632_v31 = vmul.f32 0.0078125, %v620_v27  ;;  %v633_v57 = vmul.f32 0.0078125, %v622_v47  ;;  %1786 = vmatprep.subr.bf16.mxu1 %v1949_v23  ;;  %v1951_v25 = vld [vmem:[#allocation10 + $0x10] sm:$0xff]   ;;  %v1956_v27 = vld [vmem:[#allocation10 + $0x38] sm:$0xff]  }
 0x1ef   : > { %1967 = vrsqrt.f32 %v639_v24  ;;  %v672_v38 = vmul.f32 %v1705_v32, %v655_v30  ;;  %v1950_v24 = vld [vmem:[#allocation10 + $0x8] sm:$0xff]   ;;  %1787 = vmatpush3.bf16.msra.mxu1 %v1949_v23  ;;  %v722_v30 = vlaneseq }
 0x1f0   : > { %v1960_v33 = vpop.eup %1959  ;;  %v642_v40 = vadd.f32 1e-06, %v632_v31  ;;  %v643_v63 = vadd.f32 1e-06, %v633_v57  ;;  %1788 = vmatprep.subr.bf16.mxu1 %v1950_v24 }
 0x1f1   : > { %v656_v37 = vmul.f32 %v1960_v33, %v2646_v28  ;;  %v1962_v39 = vpop.eup %1961  ;;  %v624_v42 = vpop.xlane.xlu1 %623  ;;  %v689_v48 = vadd.f32 %v1706_v41, %v672_v38  ;;  %v2701_v31 = vshrl.u32 %v722_v30, 7  ;;  %v720_v33 = vld [vmem:[%s3101_s5] sm:$0x3] }
 0x1f2   : > { %v657_v52 = vmul.f32 %v1962_v39, %v2642_v22  ;;  %1969 = vrsqrt.f32 %v642_v40  ;;  %v634_v28 = vmul.f32 0.0078125, %v624_v42 }
 0x1f3   : > { %v673_v21 = vmul.f32 %v1705_v32, %v656_v37  ;;  %1971 = vrsqrt.f32 %v641_v46  ;;  %1789 = vmatpush3.bf16.msra.mxu1 %v1950_v24 }
 0x1f4   : > { %v1964_v45 = vpop.eup %1963  ;;  %v674_v58 = vmul.f32 %v1705_v32, %v657_v52  ;;  %v644_v60 = vadd.f32 1e-06, %v634_v28  ;;  %1790 = vmatprep.subr.bf16.mxu1 %v1951_v25 }
 0x1f5   : > { %v690_v49 = vadd.f32 %v1706_v41, %v673_v21  ;;  %v658_v53 = vmul.f32 %v1964_v45, %v2648_v29 }
 0x1f6   : > { %v691_v22 = vadd.f32 %v1706_v41, %v674_v58  ;;  %1973 = vrsqrt.f32 %v644_v60 }
 0x1f7   : > { %v699_v54 = vpack.c.bf16 %v690_v49, %v689_v48  ;;  %v675_v55 = vmul.f32 %v1705_v32, %v658_v53  ;;  %1975 = vrsqrt.f32 %v643_v63  ;;  %1791 = vmatpush3.bf16.msra.mxu1 %v1951_v25 }
 0x1f8   : > { %v1966_v56 = vpop.eup %1965 }
 0x1f9   : > { %845 = vmatmul.mubr.bf16.vlgmr.msra.gmra.mrb[0].mxu0 %v699_v54  ;;  %v1968_v59 = vpop.eup %1967  ;;  %v692_v61 = vadd.f32 %v1706_v41, %v675_v55  ;;  %v660_v62 = vmul.f32 %v1966_v56, %v2656_v36  ;;  %v2722_v55 = vstv %s1733_s19  ;;  %v967_v56 = vadd.s32 8, %v2701_v31  ;;  %s3173_s19 = sld [smem:[#allocation32_spill]] }
 0x1fa   : > { %854 = vmatprep.mubr.bf16.mxu0 %v2302_v4  ;;  %v659_v29 = vmul.f32 %v1968_v59, %v2654_v35 }
 0x1fb   : > { %v700_v0 = vpack.c.bf16 %v692_v61, %v691_v22  ;;  %v677_v1 = vmul.f32 %v1705_v32, %v660_v62  ;;  %v978_v62 = vadd.s32 %v2722_v55, %v2701_v31 }
 0x1fc   : > { %v1970_v2 = vpop.eup %1969  ;;  %v676_v3 = vmul.f32 %v1705_v32, %v659_v29 }
 0x1fd   : > { %v1972_v5 = vpop.eup %1971  ;;  %v694_v6 = vadd.f32 %v1706_v41, %v677_v1  ;;  %v662_v7 = vmul.f32 %v1970_v2, %v2664_v44  ;;  %v724_v2 = vsub.s32 0, %v2701_v31 }
 0x1fe   : > { %v693_v8 = vadd.f32 %v1706_v41, %v676_v3  ;;  %v661_v36 = vmul.f32 %v1972_v5, %v2662_v43 }
 0x1ff   : > { %v679_v10 = vmul.f32 %v1705_v32, %v662_v7  ;;  %v969_v7 = vadd.s32 24, %v2701_v31 }
 0x200   : > { %v701_v9 = vpack.c.bf16 %v694_v6, %v693_v8  ;;  %v1974_v11 = vpop.eup %1973  ;;  %v678_v35 = vmul.f32 %v1705_v32, %v661_v36  ;;  %v968_v6 = vadd.s32 16, %v2701_v31  ;;  %v1734_v8 = vadd.s32 4294967288, %v978_v62 }
 0x201   : > { %855 = vmatmul.mubr.bf16.gmra.mrb[4].mxu0 %v700_v0  ;;  %v1976_v12 = vpop.eup %1975  ;;  %v696_v13 = vadd.f32 %v1706_v41, %v679_v10  ;;  %v664_v14 = vmul.f32 %v1974_v11, %v2672_v51  ;;  %v1952_v51 = vld [vmem:[#allocation10 + $0x18] sm:$0xff]   ;;  %v979_v0 = vadd.s32 %v2722_v55, %v967_v56  ;;  %v2737_v11 = vrot.slane %v720_v33, %v724_v2 }
 0x202   : > { %864 = vmatprep.mubr.bf16.mxu0 %v2302_v4  ;;  %v695_v15 = vadd.f32 %v1706_v41, %v678_v35  ;;  %v663_v16 = vmul.f32 %v1976_v12, %v2670_v50  ;;  %1792 = vmatprep.subr.bf16.mxu1 %v1952_v51  ;;  %v1953_v50 = vld [vmem:[#allocation10 + $0x20] sm:$0xff]   ;;  %vm998_vm0 = vcmp.ge.s32.totalorder %v1734_v8, 0  ;;  %vm1008_vm1 = vcmp.lt.s32.totalorder %v1734_v8, 192 }
 0x203   : > { %v681_v18 = vmul.f32 %v1705_v32, %v664_v14  ;;  %1793 = vmatpush3.bf16.msra.mxu1 %v1952_v51  ;;  %v981_v14 = vadd.s32 %v2722_v55, %v969_v7  ;;  %vm2750_vm4 = vmand %vm998_vm0, %vm1008_vm1 }
 0x204   : > { %v702_v17 = vpack.c.bf16 %v696_v13, %v695_v15  ;;  %v680_v44 = vmul.f32 %v1705_v32, %v663_v16  ;;  %1794 = vmatprep.subr.bf16.mxu1 %v1953_v50  ;;  %v728_v32 = vsub.s32 1, %v2701_v31  ;;  %v980_v13 = vadd.s32 %v2722_v55, %v968_v6 }
 0x205   : > { %v698_v43 = vadd.f32 %v1706_v41, %v681_v18 }
 0x206   : > { %v697_v19 = vadd.f32 %v1706_v41, %v680_v44  ;;  %v2707_v34 = vrot.slane %v720_v33, %v728_v32 }
 0x207   : > { %1795 = vmatpush3.bf16.msra.mxu1 %v1953_v50  ;;  %v1736_v50 = vadd.s32 4294967288, %v980_v13 }
 0x208   : > { %v703_v20 = vpack.c.bf16 %v698_v43, %v697_v19  ;;  %1796 = vmatprep.subr.bf16.mxu1 %v1954_v26  ;;  %v970_v43 = vadd.s32 32, %v2701_v31 }
 0x209   : > { %865 = vmatmul.mubr.bf16.gmra.mrb[8].mxu0 %v701_v9  ;;  %v1735_v9 = vadd.s32 4294967288, %v979_v0  ;;  %vm1000_vm6 = vcmp.ge.s32.totalorder %v1736_v50, 0  ;;  %vm1010_vm7 = vcmp.lt.s32.totalorder %v1736_v50, 192 }
 0x20a   : > { %874 = vmatprep.mubr.bf16.mxu0 %v2302_v4  ;;  %v982_v33 = vadd.s32 %v2722_v55, %v970_v43  ;;  %vm1020_vm10 = vmand %vm1000_vm6, %vm1010_vm7 }
 0x20b   : > { %1797 = vmatpush3.bf16.msra.mxu1 %v1954_v26  ;;  %vm999_vm2 = vcmp.ge.s32.totalorder %v1735_v9, 0  ;;  %vm1009_vm3 = vcmp.lt.s32.totalorder %v1735_v9, 192  ;;  %v1737_v26 = vadd.s32 4294967288, %v981_v14 }
 0x20c   : > { %vm1019_vm5 = vmand %vm999_vm2, %vm1009_vm3 }
 0x20d   : > { %vm1001_vm8 = vcmp.ge.s32.totalorder %v1737_v26, 0  ;;  %vm1011_vm9 = vcmp.lt.s32.totalorder %v1737_v26, 192 }
 0x20e   : > { %vm1021_vm11 = vmand %vm1001_vm8, %vm1011_vm9 }
 0x211   : > { %875 = vmatmul.mubr.bf16.gmra.mrb[12].mxu0 %v702_v17 }
 0x212   : > { %884 = vmatprep.mubr.bf16.mxu0 %v2302_v4  ;;  %v1955_v4 = vld [vmem:[#allocation10 + $0x30] sm:$0xff]  }
 0x213   : > { %1798 = vmatprep.subr.bf16.mxu1 %v1955_v4 }
 0x214   : > { %1799 = vmatpush3.bf16.msra.mxu1 %v1955_v4 }
 0x215   : > { %1800 = vmatprep.subr.bf16.mxu1 %v1956_v27 }
 0x218   : > { %1801 = vmatpush3.bf16.msra.mxu1 %v1956_v27 }
 0x219   : > { %885 = vmatmul.mubr.bf16.gmra.mrb[16].mxu0 %v703_v20 }
 0x2cc   : > { %v2709_v37 = vpop.f32.mrb[0].mxu0 }
 0x2cd   : > { %v848_v38 = vpop.f32.mrb[1].mxu0  ;;  %v847_v20 = vadd.f32 %v2709_v37, %v2737_v11 }
 0x2ce   : > { %v849_v39 = vadd.f32 %v848_v38, %v2707_v34  ;;  %v2712_v40 = vpop.f32.mrb[2].mxu0 }
 0x2cf   : > { %v852_v41 = vpop.f32.mrb[3].mxu0  ;;  %v851_v27 = vadd.f32 %v2712_v40, %v2737_v11 }
 0x2d0   : > { %v1723_v42 = vmul.f32 -1.442695, %v849_v39  ;;  %v853_v21 = vadd.f32 %v852_v41, %v2707_v34  ;;  %v971_v41 = vadd.s32 40, %v2701_v31 }
 0x2d2   : > { %1977 = vpow2.f32 %v1723_v42  ;;  %v1724_v45 = vmul.f32 -1.442695, %v853_v21  ;;  %v972_v21 = vadd.s32 48, %v2701_v31 }
 0x2d4   : > { %1979 = vpow2.f32 %v1724_v45  ;;  %v2715_v46 = vpop.f32.mrb[4].mxu0  ;;  %v973_v45 = vadd.s32 56, %v2701_v31 }
 0x2d5   : > { %v858_v47 = vpop.f32.mrb[5].mxu0 }
 0x2d6   : > { %v859_v48 = vadd.f32 %v858_v47, %v2707_v34  ;;  %v2718_v49 = vpop.f32.mrb[6].mxu0  ;;  %v985_v0 = vadd.s32 %v2722_v55, %v973_v45 }
 0x2d7   : > { %v862_v52 = vpop.f32.mrb[7].mxu0 }
 0x2d8   : > { %v1725_v53 = vmul.f32 -1.442695, %v859_v48  ;;  %v863_v28 = vadd.f32 %v862_v52, %v2707_v34 }
 0x2da   : > { %1981 = vpow2.f32 %v1725_v53  ;;  %v1726_v54 = vmul.f32 -1.442695, %v863_v28 }
 0x2dc   : > { %v1978_v57 = vpop.eup %1977  ;;  %1983 = vpow2.f32 %v1726_v54  ;;  %v2725_v58 = vpop.f32.mrb[8].mxu0  ;;  %v1738_v54 = vadd.s32 4294967288, %v982_v33 }
 0x2dd   : > { %v925_v59 = vadd.f32 1.0, %v1978_v57  ;;  %v868_v60 = vpop.f32.mrb[9].mxu0 }
 0x2de   : > { %v1980_v61 = vpop.eup %1979  ;;  %v869_v63 = vadd.f32 %v868_v60, %v2707_v34  ;;  %v2730_v22 = vpop.f32.mrb[10].mxu0  ;;  %v983_v60 = vadd.s32 %v2722_v55, %v971_v41  ;;  %vm1002_vm12 = vcmp.ge.s32.totalorder %v1738_v54, 0  ;;  %vm1012_vm13 = vcmp.lt.s32.totalorder %v1738_v54, 192 }
 0x2df   : > { %1985 = vrcp.f32 %v925_v59  ;;  %v926_v29 = vadd.f32 1.0, %v1980_v61  ;;  %v872_v1 = vpop.f32.mrb[11].mxu0  ;;  %v857_v59 = vadd.f32 %v2715_v46, %v2737_v11  ;;  %v861_v46 = vadd.f32 %v2718_v49, %v2737_v11  ;;  %v2794_v49 = vld [vmem:[%s3162_s17 + $0x1] ss:$0 sm:$0xff]  ;;  %vm1022_vm0 = vmand %vm1002_vm12, %vm1012_vm13 }
 0x2e0   : > { %v1727_v3 = vmul.f32 -1.442695, %v869_v63  ;;  %v873_v5 = vadd.f32 %v872_v1, %v2707_v34  ;;  %v974_v1 = vadd.s32 64, %v2701_v31  ;;  %v1739_v8 = vadd.s32 4294967288, %v983_v60 }
 0x2e1   : > { %1987 = vrcp.f32 %v926_v29  ;;  %v984_v29 = vadd.s32 %v2722_v55, %v972_v21  ;;  %v871_v50 = vadd.f32 %v2730_v22, %v2737_v11 }
 0x2e2   : > { %1989 = vpow2.f32 %v1727_v3  ;;  %v1728_v36 = vmul.f32 -1.442695, %v873_v5  ;;  %vm1003_vm14 = vcmp.ge.s32.totalorder %v1739_v8, 0  ;;  %vm1013_vm15 = vcmp.lt.s32.totalorder %v1739_v8, 192  ;;  %v2877_v8 = vld [vmem:[%s3167_s13] ss:$0 sm:$0xff]  ;;  %s3038_s13 = scalar_lea.hbm %s3177_s29, %s1771_s24 }
 0x2e3   : > { %v2800_v14 = vadd.s32 4294967288, %v984_v29  ;;  %vm2827_vm1 = vmand %vm1003_vm14, %vm1013_vm15 }
 0x2e4   : > { %v1982_v10 = vpop.eup %1981  ;;  %1991 = vpow2.f32 %v1728_v36  ;;  %v2739_v35 = vpop.f32.mrb[12].mxu0  ;;  %v2789_v36 = vld [vmem:[%s3162_s17] ss:$0 sm:$0xff] }
 0x2e5   : > { %v927_v12 = vadd.f32 1.0, %v1982_v10  ;;  %v878_v15 = vpop.f32.mrb[13].mxu0  ;;  %v986_v10 = vadd.s32 %v2722_v55, %v974_v1  ;;  %vm1004_vm2 = vcmp.ge.s32.totalorder %v2800_v14, 0  ;;  %vm1014_vm3 = vcmp.lt.s32.totalorder %v2800_v14, 192 }
 0x2e6   : > { %v1984_v16 = vpop.eup %1983  ;;  %v879_v17 = vadd.f32 %v878_v15, %v2707_v34  ;;  %v2744_v18 = vpop.f32.mrb[14].mxu0  ;;  %v2802_v15 = vadd.s32 4294967288, %v985_v0  ;;  %v877_v54 = vadd.f32 %v2739_v35, %v2737_v11  ;;  %vm2867_vm7 = vmand %vm1004_vm2, %vm1014_vm3 }
 0x2e7   : > { %1993 = vrcp.f32 %v927_v12  ;;  %v928_v44 = vadd.f32 1.0, %v1984_v16  ;;  %v882_v19 = vpop.f32.mrb[15].mxu0  ;;  %v975_v16 = vadd.s32 72, %v2701_v31  ;;  %v2812_v31 = vadd.s32 4294967288, %v986_v10 }
 0x2e8   : > { %v1729_v23 = vmul.f32 -1.442695, %v879_v17  ;;  %v883_v24 = vadd.f32 %v882_v19, %v2707_v34 }
 0x2e9   : > { %v1986_v25 = vpop.eup %1985  ;;  %1995 = vrcp.f32 %v928_v44  ;;  %vm1006_vm6 = vcmp.ge.s32.totalorder %v2812_v31, 0  ;;  %vm1016_vm9 = vcmp.lt.s32.totalorder %v2812_v31, 192 }
 0x2ea   : > { %v955_v4 = vmul.f32 %v1986_v25, %v847_v20  ;;  %1997 = vpow2.f32 %v1729_v23  ;;  %v1730_v30 = vmul.f32 -1.442695, %v883_v24  ;;  %v867_v23 = vadd.f32 %v2725_v58, %v2737_v11  ;;  %v2817_v25 = vld [vmem:[%s3162_s17 + $0x2] ss:$0 sm:$0xff]  ;;  %vm1026_vm12 = vmand %vm1006_vm6, %vm1016_vm9 }
 0x2eb   : > { %v1988_v32 = vpop.eup %1987  ;;  %v987_v58 = vadd.s32 %v2722_v55, %v975_v16 }
 0x2ec   : > { %v1990_v37 = vpop.eup %1989  ;;  %v1028_v38 = vsel %vm2750_vm4, %v955_v4, 0.0  ;;  %v956_v39 = vmul.f32 %v1988_v32, %v851_v27  ;;  %1999 = vpow2.f32 %v1730_v30  ;;  %v2761_v42 = vpop.f32.mrb[16].mxu0  ;;  %v2825_v4 = vld [vmem:[%s3162_s17 + $0x3] ss:$0 sm:$0xff]  ;;  %vm1005_vm4 = vcmp.ge.s32.totalorder %v2802_v15, 0 }
 0x2ed   : > { %1038 = vst [vmem:[#allocation3] sm:$0xff] %v1028_v38  ;;  %v929_v40 = vadd.f32 1.0, %v1990_v37  ;;  %v888_v47 = vpop.f32.mrb[17].mxu0 }
 0x2ee   : > { %v1992_v48 = vpop.eup %1991  ;;  %v2765_v52 = vsel %vm1019_vm5, %v956_v39, 0.0  ;;  %v889_v53 = vadd.f32 %v888_v47, %v2707_v34  ;;  %v2768_v28 = vpop.f32.mrb[18].mxu0  ;;  %vm1015_vm5 = vcmp.lt.s32.totalorder %v2802_v15, 192 }
 0x2ef   : > { %1039 = vst [vmem:[#allocation3 + $0x8] sm:$0xff] %v2765_v52  ;;  %2001 = vrcp.f32 %v929_v40  ;;  %v930_v56 = vadd.f32 1.0, %v1992_v48  ;;  %v892_v57 = vpop.f32.mrb[19].mxu0  ;;  %v1111_v38 = vmul.f32 %v2817_v25, %v2765_v52  ;;  %v2846_v48 = vld [vmem:[%s3162_s17 + $0x4] ss:$0 sm:$0xff]  ;;  %vm2885_vm8 = vmand %vm1005_vm4, %vm1015_vm5 }
 0x2f0   : > { %v1731_v61 = vmul.f32 -1.442695, %v889_v53  ;;  %v893_v62 = vadd.f32 %v892_v57, %v2707_v34 }
 0x2f1   : > { %v1994_v63 = vpop.eup %1993  ;;  %2003 = vrcp.f32 %v930_v56  ;;  %v2855_v56 = vadd.s32 4294967288, %v987_v58 }
 0x2f2   : > { %v957_v2 = vmul.f32 %v1994_v63, %v857_v59  ;;  %2005 = vpow2.f32 %v1731_v61  ;;  %v1732_v3 = vmul.f32 -1.442695, %v893_v62 }
 0x2f3   : > { %v1996_v5 = vpop.eup %1995 }
 0x2f4   : > { %v1998_v34 = vpop.eup %1997  ;;  %v2784_v6 = vsel %vm1020_vm10, %v957_v2, 0.0  ;;  %v958_v7 = vmul.f32 %v1996_v5, %v861_v46  ;;  %2007 = vpow2.f32 %v1732_v3  ;;  %vm1007_vm10 = vcmp.ge.s32.totalorder %v2855_v56, 0 }
 0x2f5   : > { %1040 = vst [vmem:[#allocation3 + $0x10] sm:$0xff] %v2784_v6  ;;  %v931_v9 = vadd.f32 1.0, %v1998_v34  ;;  %v1112_v63 = vmul.f32 %v2817_v25, %v2784_v6  ;;  %v881_v34 = vadd.f32 %v2744_v18, %v2737_v11 }
 0x2f6   : > { %v2000_v12 = vpop.eup %1999  ;;  %v2798_v13 = vsel %vm1021_vm11, %v958_v7, 0.0  ;;  %v1048_v17 = vld [vmem:[#allocation3 + $0x6] sm:$0xff]  ;;  %vm1017_vm11 = vcmp.lt.s32.totalorder %v2855_v56, 192 }
 0x2f7   : > { %v1069_v44 = vld [vmem:[#allocation3 + $0x7] sm:$0xff]  ;;  %1041 = vst [vmem:[#allocation3 + $0x18] sm:$0xff] %v2798_v13  ;;  %2009 = vrcp.f32 %v931_v9  ;;  %v932_v43 = vadd.f32 1.0, %v2000_v12  ;;  %v1061_v19 = vmul.f32 %v2789_v36, %v1048_v17  ;;  %v1113_v14 = vmul.f32 %v2817_v25, %v2798_v13  ;;  %vm2932_vm13 = vmand %vm1007_vm10, %vm1017_vm11 }
 0x2f8   : > { %v1082_v20 = vmul.f32 %v2794_v49, %v1069_v44 }
 0x2f9   : > { %v2002_v24 = vpop.eup %2001  ;;  %2011 = vrcp.f32 %v932_v43 }
 0x2fa   : > { %v959_v51 = vmul.f32 %v2002_v24, %v867_v23  ;;  %v1090_v26 = vadd.f32 %v1082_v20, %v1061_v19 }
 0x2fb   : > { %v2004_v27 = vpop.eup %2003 }
 0x2fc   : > { %v2006_v22 = vpop.eup %2005  ;;  %v2834_v32 = vsel %vm1022_vm0, %v959_v51, 0.0  ;;  %v960_v55 = vmul.f32 %v2004_v27, %v871_v50  ;;  %v1049_v33 = vld [vmem:[#allocation3 + $0xe] sm:$0xff]  ;;  %v1119_v57 = vadd.f32 %v1111_v38, %v1090_v26 }
 0x2fd   : > { %v1070_v37 = vld [vmem:[#allocation3 + $0xf] sm:$0xff]  ;;  %1042 = vst [vmem:[#allocation3 + $0x20] sm:$0xff] %v2834_v32  ;;  %v933_v41 = vadd.f32 1.0, %v2006_v22  ;;  %v1062_v40 = vmul.f32 %v2789_v36, %v1049_v33 }
 0x2fe   : > { %v1127_v39 = vld [vmem:[#allocation3 + $0x9] sm:$0xff]  ;;  %v1083_v21 = vmul.f32 %v2794_v49, %v1070_v37  ;;  %v2008_v53 = vpop.eup %2007  ;;  %v2850_v52 = vsel %vm2827_vm1, %v960_v55, 0.0  ;;  %v1128_v59 = vld [vmem:[#allocation3 + $0x11] sm:$0xff]  ;;  %v1114_v55 = vmul.f32 %v2817_v25, %v2834_v32 }
 0x2ff   : > { %v1140_v45 = vmul.f32 %v2825_v4, %v1127_v39  ;;  %v1156_v47 = vld [vmem:[#allocation3 + $0xa] sm:$0xff]  ;;  %v1050_v60 = vld [vmem:[#allocation3 + $0x16] sm:$0xff]  ;;  %1043 = vst [vmem:[#allocation3 + $0x28] sm:$0xff] %v2850_v52  ;;  %2013 = vrcp.f32 %v933_v41  ;;  %v934_v61 = vadd.f32 1.0, %v2008_v53  ;;  %v1141_v7 = vmul.f32 %v2825_v4, %v1128_v59 }
 0x300   : > { %v1091_v62 = vadd.f32 %v1083_v21, %v1062_v40  ;;  %v1071_v29 = vld [vmem:[#allocation3 + $0x17] sm:$0xff]  ;;  %v1169_v35 = vmul.f32 %v2846_v48, %v1156_v47  ;;  %v1063_v2 = vmul.f32 %v2789_v36, %v1050_v60 }
 0x301   : > { %v1148_v0 = vadd.f32 %v1140_v45, %v1119_v57  ;;  %v1157_v1 = vld [vmem:[#allocation3 + $0x12] sm:$0xff]  ;;  %v1084_v46 = vmul.f32 %v2794_v49, %v1071_v29  ;;  %v2010_v3 = vpop.eup %2009  ;;  %2015 = vrcp.f32 %v934_v61  ;;  %v887_v45 = vadd.f32 %v2761_v42, %v2737_v11 }
 0x302   : > { %v1120_v6 = vadd.f32 %v1112_v63, %v1091_v62  ;;  %v961_v9 = vmul.f32 %v2010_v3, %v877_v54  ;;  %v1170_v44 = vmul.f32 %v2846_v48, %v1157_v1  ;;  %v891_v42 = vadd.f32 %v2768_v28, %v2737_v11 }
 0x303   : > { %v1177_v10 = vadd.f32 %v1169_v35, %v1148_v0  ;;  %v1092_v12 = vadd.f32 %v1084_v46, %v1063_v2  ;;  %v2012_v16 = vpop.eup %2011  ;;  %v1115_v3 = vmul.f32 %v2817_v25, %v2850_v52 }
 0x304   : > { %v1149_v17 = vadd.f32 %v1141_v7, %v1120_v6  ;;  %v2894_v43 = vsel %vm2867_vm7, %v961_v9, 0.0  ;;  %v962_v13 = vmul.f32 %v2012_v16, %v881_v34  ;;  %v1051_v15 = vld [vmem:[#allocation3 + $0x1e] sm:$0xff] }
 0x305   : > { %v2897_v19 = vadd.f32 %v2877_v8, %v1177_v10  ;;  %v1072_v20 = vld [vmem:[#allocation3 + $0x1f] sm:$0xff]  ;;  %v1121_v23 = vadd.f32 %v1113_v14, %v1092_v12  ;;  %1044 = vst [vmem:[#allocation3 + $0x30] sm:$0xff] %v2894_v43  ;;  %v1064_v50 = vmul.f32 %v2789_v36, %v1051_v15 }
 0x306   : > { %v1129_v24 = vld [vmem:[#allocation3 + $0x19] sm:$0xff]  ;;  %v1178_v51 = vadd.f32 %v1170_v44, %v1149_v17  ;;  %v1085_v58 = vmul.f32 %v2794_v49, %v1072_v20  ;;  %v2905_v30 = vsel %vm2885_vm8, %v962_v13, 0.0  ;;  %v1130_v33 = vld [vmem:[#allocation3 + $0x21] sm:$0xff]  ;;  %v1116_v44 = vmul.f32 %v2817_v25, %v2894_v43 }
 0x307   : > { %v1142_v26 = vmul.f32 %v2825_v4, %v1129_v24  ;;  %v1158_v27 = vld [vmem:[#allocation3 + $0x1a] sm:$0xff]  ;;  %v1750_v22 = vmul.f32 -1.442695, %v2897_v19  ;;  %v1052_v37 = vld [vmem:[#allocation3 + $0x26] sm:$0xff]  ;;  %1045 = vst [vmem:[#allocation3 + $0x38] sm:$0xff] %v2905_v30  ;;  %v1143_v60 = vmul.f32 %v2825_v4, %v1130_v33  ;;  %v1117_v43 = vmul.f32 %v2817_v25, %v2905_v30 }
 0x308   : > { %v2913_v38 = vadd.f32 %v2877_v8, %v1178_v51  ;;  %v1093_v39 = vadd.f32 %v1085_v58, %v1064_v50  ;;  %v1171_v40 = vmul.f32 %v2846_v48, %v1158_v27  ;;  %v1073_v21 = vld [vmem:[#allocation3 + $0x27] sm:$0xff]  ;;  %v1065_v53 = vmul.f32 %v2789_v36, %v1052_v37 }
 0x309   : > { %v1150_v41 = vadd.f32 %v1142_v26, %v1121_v23  ;;  %2017 = vpow2.f32 %v1750_v22  ;;  %v1159_v47 = vld [vmem:[#allocation3 + $0x22] sm:$0xff]  ;;  %v1086_v32 = vmul.f32 %v2794_v49, %v1073_v21  ;;  %v2014_v54 = vpop.eup %2013 }
 0x30a   : > { %v1751_v57 = vmul.f32 -1.442695, %v2913_v38  ;;  %v1122_v59 = vadd.f32 %v1114_v55, %v1093_v39  ;;  %v963_v62 = vmul.f32 %v2014_v54, %v887_v45  ;;  %v1172_v1 = vmul.f32 %v2846_v48, %v1159_v47 }
 0x30b   : > { %v1179_v61 = vadd.f32 %v1171_v40, %v1150_v41  ;;  %v1094_v63 = vadd.f32 %v1086_v32, %v1065_v53  ;;  %v2016_v29 = vpop.eup %2015 }
 0x30c   : > { %2019 = vpow2.f32 %v1751_v57  ;;  %v1151_v31 = vadd.f32 %v1143_v60, %v1122_v59  ;;  %v1036_v2 = vsel %vm1026_vm12, %v963_v62, 0.0  ;;  %v964_v46 = vmul.f32 %v2016_v29, %v891_v42  ;;  %v1053_v11 = vld [vmem:[#allocation3 + $0x2e] sm:$0xff] }
 0x30d   : > { %v2938_v35 = vadd.f32 %v2877_v8, %v1179_v61  ;;  %v1074_v28 = vld [vmem:[#allocation3 + $0x2f] sm:$0xff]  ;;  %1046 = vst [vmem:[#allocation3 + $0x40] sm:$0xff] %v1036_v2  ;;  %v1066_v6 = vmul.f32 %v2789_v36, %v1053_v11  ;;  %v1123_v12 = vadd.f32 %v1115_v3, %v1094_v63  ;;  %v1118_v29 = vmul.f32 %v2817_v25, %v1036_v2 }
 0x30e   : > { %v1131_v5 = vld [vmem:[#allocation3 + $0x29] sm:$0xff]  ;;  %v1180_v56 = vadd.f32 %v1172_v1, %v1151_v31  ;;  %v1087_v7 = vmul.f32 %v2794_v49, %v1074_v28  ;;  %v1037_v10 = vsel %vm2932_vm13, %v964_v46, 0.0  ;;  %v1132_v14 = vld [vmem:[#allocation3 + $0x31] sm:$0xff] }
 0x30f   : > { %v1752_v34 = vmul.f32 -1.442695, %v2938_v35  ;;  %v1160_v9 = vld [vmem:[#allocation3 + $0x2a] sm:$0xff]  ;;  %v1144_v16 = vmul.f32 %v2825_v4, %v1131_v5  ;;  %v1054_v18 = vld [vmem:[#allocation3 + $0x36] sm:$0xff]  ;;  %1047 = vst [vmem:[#allocation3 + $0x48] sm:$0xff] %v1037_v10  ;;  %v1145_v26 = vmul.f32 %v2825_v4, %v1132_v14 }
 0x310   : > { %v2949_v52 = vadd.f32 %v2877_v8, %v1180_v56  ;;  %v1095_v17 = vadd.f32 %v1087_v7, %v1066_v6  ;;  %v1075_v13 = vld [vmem:[#allocation3 + $0x37] sm:$0xff]  ;;  %v1173_v23 = vmul.f32 %v2846_v48, %v1160_v9  ;;  %v1067_v24 = vmul.f32 %v2789_v36, %v1054_v18 }
 0x311   : > { %2021 = vpow2.f32 %v1752_v34  ;;  %v1152_v15 = vadd.f32 %v1144_v16, %v1123_v12  ;;  %v1161_v20 = vld [vmem:[#allocation3 + $0x32] sm:$0xff]  ;;  %v1088_v51 = vmul.f32 %v2794_v49, %v1075_v13 }
 0x312   : > { %v1753_v50 = vmul.f32 -1.442695, %v2949_v52  ;;  %v1124_v58 = vadd.f32 %v1116_v44, %v1095_v17  ;;  %v1174_v39 = vmul.f32 %v2846_v48, %v1161_v20 }
 0x313   : > { %v2018_v27 = vpop.eup %2017  ;;  %v1181_v22 = vadd.f32 %v1173_v23, %v1152_v15  ;;  %v1096_v55 = vadd.f32 %v1088_v51, %v1067_v24 }
 0x314   : > { %v1224_v33 = vadd.f32 1.0, %v2018_v27  ;;  %2023 = vpow2.f32 %v1753_v50  ;;  %v1153_v37 = vadd.f32 %v1145_v26, %v1124_v58  ;;  %v1055_v40 = vld [vmem:[#allocation3 + $0x3e] sm:$0xff] }
 0x315   : > { %v2962_v41 = vadd.f32 %v2877_v8, %v1181_v22  ;;  %v1076_v21 = vld [vmem:[#allocation3 + $0x3f] sm:$0xff]  ;;  %v1068_v32 = vmul.f32 %v2789_v36, %v1055_v40  ;;  %v1125_v57 = vadd.f32 %v1117_v43, %v1096_v55 }
 0x316   : > { %v1133_v45 = vld [vmem:[#allocation3 + $0x39] sm:$0xff]  ;;  %v2020_v47 = vpop.eup %2019  ;;  %v1182_v53 = vadd.f32 %v1174_v39, %v1153_v37  ;;  %v1089_v54 = vmul.f32 %v2794_v49, %v1076_v21  ;;  %2025 = vrcp.f32 %v1224_v33  ;;  %v1134_v61 = vld [vmem:[#allocation3 + $0x41] sm:$0xff]  ;;  %v1758_v39 = vld [vmem:[%s3172_s21] ss:$0 sm:$0xff]  ;;  %s2303_s21 = smov [#allocation12]  }
 0x317   : > { %v1162_v59 = vld [vmem:[#allocation3 + $0x3a] sm:$0xff]  ;;  %v1225_v30 = vadd.f32 1.0, %v2020_v47  ;;  %v1754_v60 = vmul.f32 -1.442695, %v2962_v41  ;;  %v1146_v62 = vmul.f32 %v2825_v4, %v1133_v45  ;;  %v1163_v31 = vld [vmem:[#allocation3 + $0x42] sm:$0xff]  ;;  %v1147_v11 = vmul.f32 %v2825_v4, %v1134_v61 }
 0x318   : > { %v1197_v42 = vadd.f32 %v2877_v8, %v1182_v53  ;;  %v1097_v63 = vadd.f32 %v1089_v54, %v1068_v32  ;;  %v1175_v36 = vmul.f32 %v2846_v48, %v1162_v59  ;;  %v1176_v56 = vmul.f32 %v2846_v48, %v1163_v31  ;;  %v1398_v21 = vld [vmem:[%s2612_s11 + $0x10] sm:$0xff]  ;;  %v1399_v53 = vld [vmem:[%s2612_s11 + $0x18] sm:$0xff]  ;;  %v1400_v31 = vld [vmem:[%s2612_s11 + $0x20] sm:$0xff] }
 0x319   : > { %2027 = vrcp.f32 %v1225_v30  ;;  %v1154_v0 = vadd.f32 %v1146_v62, %v1125_v57  ;;  %v1396_v30 = vld [vmem:[%s2612_s11] sm:$0xff]  ;;  %v1397_v62 = vld [vmem:[%s2612_s11 + $0x8] sm:$0xff] }
 0x31a   : > { %2029 = vpow2.f32 %v1754_v60  ;;  %v1755_v1 = vmul.f32 -1.442695, %v1197_v42  ;;  %v1126_v46 = vadd.f32 %v1118_v29, %v1097_v63 }
 0x31b   : > { %v2022_v49 = vpop.eup %2021  ;;  %v1183_v3 = vadd.f32 %v1175_v36, %v1154_v0 }
 0x31c   : > { %v1226_v28 = vadd.f32 1.0, %v2022_v49  ;;  %2031 = vpow2.f32 %v1755_v1  ;;  %v1155_v5 = vadd.f32 %v1147_v11, %v1126_v46  ;;  %v1401_v46 = vld [vmem:[%s2612_s11 + $0x28] sm:$0xff] }
 0x31d   : > { %v1198_v34 = vadd.f32 %v2877_v8, %v1183_v3 }
 0x31e   : > { %v2024_v25 = vpop.eup %2023  ;;  %v1184_v2 = vadd.f32 %v1176_v56, %v1155_v5  ;;  %2033 = vrcp.f32 %v1226_v28  ;;  %v1402_v5 = vld [vmem:[%s2612_s11 + $0x30] sm:$0xff] }
 0x31f   : > { %v1227_v6 = vadd.f32 1.0, %v2024_v25  ;;  %v1756_v7 = vmul.f32 -1.442695, %v1198_v34  ;;  %v1403_v25 = vld [vmem:[%s2612_s11 + $0x38] sm:$0xff]  ;;  %s2185_s11 = sshll.u32 %s2303_s21, 4  ;;  %s2186_s11 = int_to_ptr.vmem [resolvable:$false] %s2185_s11 }
 0x320   : > { %v1199_v9 = vadd.f32 %v2877_v8, %v1184_v2  ;;  %v2026_v10 = vpop.eup %2025  ;;  %s2187_s14 = scalar_lea.vmem %s2186_s11, 2048  ;;  %p2188_p4 = scmp.lt.s32.totalorder %s3040_s4, %s2186_s11 }
 0x321   : > { %2035 = vrcp.f32 %v1227_v6  ;;  %v1248_v16 = vmul.f32 %v2026_v10, %v2897_v19  ;;  %p2189_p6 = scmp.lt.s32.totalorder %s2187_s14, %s2181_s16 }
 0x322   : > { %2037 = vpow2.f32 %v1756_v7  ;;  %v1757_v12 = vmul.f32 -1.442695, %v1199_v9 }
 0x323   : > { %v2028_v4 = vpop.eup %2027  ;;  %p2190_p11 = por %p2189_p6, %p2188_p4 }
 0x324   : > { %v2030_v14 = vpop.eup %2029  ;;  %v1249_v18 = vmul.f32 %v2028_v4, %v2913_v38  ;;  %2039 = vpow2.f32 %v1757_v12 }
 0x325   : > { %v1228_v48 = vadd.f32 1.0, %v2030_v14  ;;  %p2191_p13 = pnand %p2190_p11, %p2184_p9 }
 0x326   : > { %v2032_v17 = vpop.eup %2031  ;;  %v1256_v44 = vpack.c.bf16 %v1249_v18, %v1248_v16 }
 0x327   : > { %v1229_v13 = vadd.f32 1.0, %v2032_v17  ;;  %2041 = vrcp.f32 %v1228_v48 }
 0x328   : > { %1802 = vmatprep.mubr.bf16.mxu1 %v1256_v44  ;;  %v2034_v15 = vpop.eup %2033 }
 0x329   : > { %2043 = vrcp.f32 %v1229_v13  ;;  %v1250_v23 = vmul.f32 %v2034_v15, %v2938_v35 }
 0x32b   : > { %v2036_v8 = vpop.eup %2035 }
 0x32c   : > { %v2038_v20 = vpop.eup %2037  ;;  %v1251_v24 = vmul.f32 %v2036_v8, %v2949_v52 }
 0x32d   : > { %v1230_v51 = vadd.f32 1.0, %v2038_v20 }
 0x32e   : > { %v2040_v50 = vpop.eup %2039  ;;  %v1257_v19 = vpack.c.bf16 %v1251_v24, %v1250_v23 }
 0x32f   : > { %v1231_v58 = vadd.f32 1.0, %v2040_v50  ;;  %2045 = vrcp.f32 %v1230_v51 }
 0x330   : > { %1803 = vmatmul.mubr.bf16.vlgmr.msra.gmra.mrb[0].mxu1 %v1257_v19 }
 0x331   : > { %v2042_v38 = vpop.eup %2041  ;;  %2047 = vrcp.f32 %v1231_v58 }
 0x332   : > { %v1252_v27 = vmul.f32 %v2042_v38, %v2962_v41 }
 0x333   : > { %v2044_v26 = vpop.eup %2043 }
 0x334   : > { %v1253_v22 = vmul.f32 %v2044_v26, %v1197_v42 }
 0x336   : > { %v1258_v55 = vpack.c.bf16 %v1253_v22, %v1252_v27 }
 0x338   : > { %1806 = vmatprep.mubr.bf16.mxu1 %v1258_v55 }
 0x339   : > { %v2046_v43 = vpop.eup %2045 }
 0x33a   : > { %v1254_v52 = vmul.f32 %v2046_v43, %v1198_v34 }
 0x33b   : > { %v2048_v35 = vpop.eup %2047 }
 0x33c   : > { %v1255_v33 = vmul.f32 %v2048_v35, %v1199_v9 }
 0x33e   : > { %v1259_v37 = vpack.c.bf16 %v1255_v33, %v1254_v52 }
 0x340   : > { %1807 = vmatmul.mubr.bf16.gmra.mrb[4].mxu1 %v1259_v37 }
 0x403   : > { %v1804_v40 = vpop.f32.mrb[0].mxu1 }
 0x404   : > { %v1374_v45 = vadd.f32 %v1804_v40, %v1758_v39  ;;  %v1365_v41 = vpop.f32.mrb[1].mxu1 }
 0x405   : > { %v1805_v47 = vpop.f32.mrb[2].mxu1  ;;  %v1366_v32 = vadd.f32 %v1758_v39, %v1365_v41 }
 0x406   : > { %v1377_v54 = vadd.f32 %v1805_v47, %v1758_v39  ;;  %v1368_v57 = vpop.f32.mrb[3].mxu1  ;;  %v1406_v59 = vadd.f32 %v1398_v21, %v1374_v45 }
 0x407   : > { %v1369_v60 = vadd.f32 %v1758_v39, %v1368_v57  ;;  %v1404_v42 = vadd.f32 %v1396_v30, %v1366_v32 }
 0x408   : > { %1416 = vadd.xlane.f32.xlu0 %v1406_v59  ;;  %v1407_v61 = vadd.f32 %v1399_v53, %v1377_v54 }
 0x409   : > { %v1405_v63 = vadd.f32 %v1397_v62, %v1369_v60  ;;  %v1767_v62 = vld [vmem:[%s3173_s19] ss:$0 sm:$0xff] }
 0x40a   : > { %1418 = vadd.xlane.f32.xlu1 %v1407_v61 }
 0x40c   : > { %1412 = vadd.xlane.f32.xlu0 %v1404_v42 }
 0x40e   : > { %1414 = vadd.xlane.f32.xlu1 %v1405_v63 }
 0x413   : > { %v1808_v29 = vpop.f32.mrb[4].mxu1 }
 0x414   : > { %v1381_v0 = vpop.f32.mrb[5].mxu1  ;;  %v1390_v11 = vadd.f32 %v1808_v29, %v1758_v39  ;;  %v1768_v29 = vld [vmem:[%s3174_s8] ss:$0 sm:$0xff] }
 0x415   : > { %v1382_v36 = vadd.f32 %v1758_v39, %v1381_v0  ;;  %v1809_v49 = vpop.f32.mrb[6].mxu1 }
 0x416   : > { %v1384_v1 = vpop.f32.mrb[7].mxu1  ;;  %v1393_v56 = vadd.f32 %v1809_v49, %v1758_v39  ;;  %v1410_v2 = vadd.f32 %v1402_v5, %v1390_v11 }
 0x417   : > { %v1385_v28 = vadd.f32 %v1758_v39, %v1384_v1  ;;  %v1408_v3 = vadd.f32 %v1400_v31, %v1382_v36 }
 0x418   : > { %v1411_v6 = vadd.f32 %v1403_v25, %v1393_v56 }
 0x419   : > { %1420 = vadd.xlane.f32.xlu0 %v1408_v3  ;;  %v1409_v34 = vadd.f32 %v1401_v46, %v1385_v28 }
 0x41b   : > { %1422 = vadd.xlane.f32.xlu1 %v1409_v34 }
 0x41d   : > { %1424 = vadd.xlane.f32.xlu0 %v1410_v2 }
 0x41f   : > { %1426 = vadd.xlane.f32.xlu1 %v1411_v6 }
 0x495   : > { %v1417_v7 = vpop.xlane.xlu0 %1416 }
 0x496   : > { %v1430_v9 = vmul.f32 0.0078125, %v1417_v7 }
 0x497   : > { %v1419_v10 = vpop.xlane.xlu1 %1418 }
 0x498   : > { %v1438_v12 = vsub.f32 %v1406_v59, %v1430_v9  ;;  %v1431_v4 = vmul.f32 0.0078125, %v1419_v10 }
 0x499   : > { %v1413_v14 = vpop.xlane.xlu0 %1412 }
 0x49a   : > { %v1439_v16 = vsub.f32 %v1407_v61, %v1431_v4  ;;  %v1428_v18 = vmul.f32 0.0078125, %v1413_v14  ;;  %v1446_v48 = vmul.f32 %v1438_v12, %v1438_v12 }
 0x49b   : > { %v1415_v17 = vpop.xlane.xlu1 %1414 }
 0x49c   : > { %v1436_v44 = vsub.f32 %v1404_v42, %v1428_v18  ;;  %v1429_v13 = vmul.f32 0.0078125, %v1415_v17  ;;  %1456 = vadd.xlane.f32.xlu0 %v1446_v48  ;;  %v1447_v15 = vmul.f32 %v1439_v16, %v1439_v16 }
 0x49e   : > { %v2991_v8 = vsub.f32 %v1405_v63, %v1429_v13  ;;  %1458 = vadd.xlane.f32.xlu1 %v1447_v15  ;;  %v1444_v20 = vmul.f32 %v1436_v44, %v1436_v44 }
 0x4a0   : > { %1452 = vadd.xlane.f32.xlu0 %v1444_v20  ;;  %v1445_v23 = vmul.f32 %v2991_v8, %v2991_v8 }
 0x4a2   : > { %1454 = vadd.xlane.f32.xlu1 %v1445_v23 }
 0x4a6   : > { %v1421_v24 = vpop.xlane.xlu0 %1420 }
 0x4a7   : > { %v1432_v51 = vmul.f32 0.0078125, %v1421_v24 }
 0x4a8   : > { %v1423_v50 = vpop.xlane.xlu1 %1422 }
 0x4a9   : > { %v2995_v19 = vsub.f32 %v1408_v3, %v1432_v51  ;;  %v1433_v58 = vmul.f32 0.0078125, %v1423_v50 }
 0x4aa   : > { %v1425_v38 = vpop.xlane.xlu0 %1424 }
 0x4ab   : > { %v2997_v26 = vsub.f32 %v1409_v34, %v1433_v58  ;;  %v1434_v27 = vmul.f32 0.0078125, %v1425_v38  ;;  %v1448_v22 = vmul.f32 %v2995_v19, %v2995_v19 }
 0x4ac   : > { %v1427_v55 = vpop.xlane.xlu1 %1426 }
 0x4ad   : > { %v3001_v43 = vsub.f32 %v1410_v2, %v1434_v27  ;;  %v1435_v35 = vmul.f32 0.0078125, %v1427_v55  ;;  %1460 = vadd.xlane.f32.xlu0 %v1448_v22  ;;  %v1449_v52 = vmul.f32 %v2997_v26, %v2997_v26 }
 0x4af   : > { %v3005_v33 = vsub.f32 %v1411_v6, %v1435_v35  ;;  %1462 = vadd.xlane.f32.xlu1 %v1449_v52  ;;  %v1450_v37 = vmul.f32 %v3001_v43, %v3001_v43 }
 0x4b1   : > { %1464 = vadd.xlane.f32.xlu0 %v1450_v37  ;;  %v1451_v39 = vmul.f32 %v3005_v33, %v3005_v33 }
 0x4b3   : > { %1466 = vadd.xlane.f32.xlu1 %v1451_v39 }
 0x529   : > { %v1457_v40 = vpop.xlane.xlu0 %1456 }
 0x52a   : > { %v1470_v21 = vmul.f32 0.0078125, %v1457_v40 }
 0x52b   : > { %v1459_v45 = vpop.xlane.xlu1 %1458 }
 0x52c   : > { %v1478_v41 = vadd.f32 1e-05, %v1470_v21  ;;  %v1471_v47 = vmul.f32 0.0078125, %v1459_v45 }
 0x52d   : > { %v1453_v53 = vpop.xlane.xlu0 %1452 }
 0x52e   : > { %2049 = vrsqrt.f32 %v1478_v41  ;;  %v1479_v32 = vadd.f32 1e-05, %v1471_v47  ;;  %v1468_v54 = vmul.f32 0.0078125, %v1453_v53 }
 0x52f   : > { %v1455_v57 = vpop.xlane.xlu1 %1454 }
 0x530   : > { %2051 = vrsqrt.f32 %v1479_v32  ;;  %v1476_v59 = vadd.f32 1e-05, %v1468_v54  ;;  %v1469_v30 = vmul.f32 0.0078125, %v1455_v57 }
 0x532   : > { %2053 = vrsqrt.f32 %v1476_v59  ;;  %v1477_v60 = vadd.f32 1e-05, %v1469_v30 }
 0x534   : > { %2055 = vrsqrt.f32 %v1477_v60 }
 0x538   : > { %v2050_v61 = vpop.eup %2049 }
 0x539   : > { %v1494_v42 = vmul.f32 %v2050_v61, %v1438_v12 }
 0x53a   : > { %v2052_v63 = vpop.eup %2051  ;;  %v1461_v0 = vpop.xlane.xlu0 %1460 }
 0x53b   : > { %v1509_v31 = vmul.f32 %v1767_v62, %v1494_v42  ;;  %v1495_v36 = vmul.f32 %v2052_v63, %v1439_v16  ;;  %v1472_v49 = vmul.f32 0.0078125, %v1461_v0 }
 0x53c   : > { %v2054_v1 = vpop.eup %2053  ;;  %v1463_v46 = vpop.xlane.xlu1 %1462 }
 0x53d   : > { %v1524_v11 = vadd.f32 %v1768_v29, %v1509_v31  ;;  %v1510_v28 = vmul.f32 %v1767_v62, %v1495_v36  ;;  %v1492_v3 = vmul.f32 %v2054_v1, %v1436_v44  ;;  %v1480_v5 = vadd.f32 1e-05, %v1472_v49 }
 0x53e   : > { %v2056_v56 = vpop.eup %2055  ;;  %v1473_v34 = vmul.f32 0.0078125, %v1463_v46  ;;  %v1465_v25 = vpop.xlane.xlu0 %1464 }
 0x53f   : > { %1532 = vst [vmem:[%s3019_s12 + $0x10] sm:$0xff] %v1524_v11  ;;  %v1525_v2 = vadd.f32 %v1768_v29, %v1510_v28  ;;  %v1507_v6 = vmul.f32 %v1767_v62, %v1492_v3  ;;  %v1493_v7 = vmul.f32 %v2056_v56, %v2991_v8  ;;  %2057 = vrsqrt.f32 %v1480_v5 }
 0x540   : > { %v1481_v9 = vadd.f32 1e-05, %v1473_v34  ;;  %v1474_v10 = vmul.f32 0.0078125, %v1465_v25  ;;  %v1467_v12 = vpop.xlane.xlu1 %1466 }
 0x541   : > { %1533 = vst [vmem:[%s3019_s12 + $0x18] sm:$0xff] %v1525_v2  ;;  %v1522_v4 = vadd.f32 %v1768_v29, %v1507_v6  ;;  %v1508_v14 = vmul.f32 %v1767_v62, %v1493_v7  ;;  %v1475_v16 = vmul.f32 0.0078125, %v1467_v12 }
 0x542   : > { %2059 = vrsqrt.f32 %v1481_v9  ;;  %v1482_v18 = vadd.f32 1e-05, %v1474_v10 }
 0x543   : > { %1530 = vst [vmem:[%s3019_s12] sm:$0xff] %v1522_v4  ;;  %v1523_v48 = vadd.f32 %v1768_v29, %v1508_v14  ;;  %v1483_v17 = vadd.f32 1e-05, %v1475_v16 }
 0x544   : > { %2061 = vrsqrt.f32 %v1482_v18 }
 0x545   : > { %1531 = vst [vmem:[%s3019_s12 + $0x8] sm:$0xff] %v1523_v48  ;;  %2063 = vrsqrt.f32 %v1483_v17 }
 0x549   : > { %v2058_v44 = vpop.eup %2057 }
 0x54a   : > { %v1496_v13 = vmul.f32 %v2058_v44, %v2995_v19 }
 0x54c   : > { %v2060_v15 = vpop.eup %2059  ;;  %v1511_v8 = vmul.f32 %v1767_v62, %v1496_v13 }
 0x54d   : > { %v1497_v20 = vmul.f32 %v2060_v15, %v2997_v26 }
 0x54e   : > { %v2062_v23 = vpop.eup %2061  ;;  %v1526_v24 = vadd.f32 %v1768_v29, %v1511_v8 }
 0x54f   : > { %v2064_v51 = vpop.eup %2063  ;;  %v1512_v50 = vmul.f32 %v1767_v62, %v1497_v20  ;;  %v1498_v58 = vmul.f32 %v2062_v23, %v3001_v43 }
 0x550   : > { %1534 = vst [vmem:[%s3019_s12 + $0x20] sm:$0xff] %v1526_v24  ;;  %v1499_v38 = vmul.f32 %v2064_v51, %v3005_v33 }
 0x551   : > { %v1527_v19 = vadd.f32 %v1768_v29, %v1512_v50  ;;  %v1513_v27 = vmul.f32 %v1767_v62, %v1498_v58 }
 0x552   : > { %v1514_v22 = vmul.f32 %v1767_v62, %v1499_v38 }
 0x553   : > { %1535 = vst [vmem:[%s3019_s12 + $0x28] sm:$0xff] %v1527_v19  ;;  %v1528_v26 = vadd.f32 %v1768_v29, %v1513_v27 }
 0x554   : > { %v1529_v55 = vadd.f32 %v1768_v29, %v1514_v22 }
 0x555   : > { %1536 = vst [vmem:[%s3019_s12 + $0x30] sm:$0xff] %v1528_v26 }
 0x556   : > { %1537 = vst [vmem:[%s3019_s12 + $0x38] sm:$0xff] %v1529_v55 }
 0x557   : > { %2194 = shalt.err (!%p2191_p13)
}
 0x558   : > { %s2195_s19 = scalar_lea.hbm %s3038_s13, 1024  ;;  %s2199_s8 = scalar_lea.hbm %s3177_s29, 6144 }
 0x559   : > { %p2196_p10 = scmp.ne.s32.totalorder %s3038_s13, %s2195_s19  ;;  %p2200_p3 = scmp.lt.u32.totalorder %s3038_s13, %s3177_s29 }
 0x55a   : > { %p2201_p7 = scmp.lt.u32.totalorder %s2199_s8, %s2195_s19  ;;  %p2203_p1 = scmp.lt.u32.totalorder %s2195_s19, %s3038_s13 }
 0x55b   : > { %p2197_p5 = pnand %p2196_p10, %p2512_p8 }
 0x55c   : > { %p2202_p12 = por %p2201_p7, %p2200_p3 }
 0x55d   : > { %p2198_p0 = pneg %p2197_p5 }
 0x55e   : > { %p2204_p2 = por %p2203_p1, %p2202_p12 }
 0x560   : > { %p2205_p9 = pnand %p2204_p2, %p2198_p0 }
 0x562   : > { %2208 = shalt.err (!%p2205_p9)
}
 0x563   : > { %s2304_s20 = smov 128   ;;  %s2305_s25 = smov 8  }
 0x564   : > { %1825 = dma.vmem_to_hbm [thread:$0]  (%p2512_p8), %s3040_s4, 1024, %s3038_s13, %s1539_s10, %s2304_s20, %s2304_s20, %s2305_s25  }
 0x565 PF: > { %s3178_s9 = sld [smem:[#allocation18_spill]]  ;;  %s3179_s24 = sld [smem:[#allocation21_spill]] }
 0x566   : > { %p1850_p4 = scmp.ge.s32.totalorder %s2291_s28, 2 }
 0x56b   : > { %s1569_s23 = sand.u32 1, %s3178_s9   ;;  %p3180_p6 = scmp.ne.s32.totalorder %s3179_s24, 0 }
 0x56c   : > { %s1570_s15 = scalar_lea.sflag [#allocation6], %s1569_s23 }
 0x56d   : > { %p1842_p11 = pnand %p1850_p4, %p3180_p6 }
 0x56f   : > { %2258 = dma.done.wait (!%p1842_p11), %s1570_s15, 1024  }
 0x570   : > { %2260 = vsyncadd (!%p1842_p11), %s1570_s15, 4294966272  ;;  %s32_s28 = sadd.s32 1, %s2291_s28   ;;  %s3181_s16 = sld [smem:[#allocation19_spill]] }
 0x571   : > { %p29_p13 = scmp.ge.s32.totalorder %s32_s28, 8   ;;  %s3182_s23 = sld [smem:[#allocation25_spill]] }
 0x572   : > { %s3183_s6 = sld [smem:[#allocation22_spill]]  ;;  %s3184_s0 = sld [smem:[#allocation24_spill]] }
 0x573   : > { %s3185_s21 = smov %s2267_s22  ;;  %s3187_s24 = smov %s2283_s26 }
 0x574   : > { %s3188_s25 = smov %s2287_s27  ;;  %31 = sbr.rel (!%p29_p13) target bundleno = 20 (0x14), region = 134 }
 0x576   : > { %s3186_s22 = smov %s3181_s16 }
 0x578   : > { %s3189_s26 = smov %s3183_s6  ;;  %s3190_s27 = smov %s3184_s0 }
 0x57b   :  { %1575 = vsyncpa [#allocation5], 1 }
 0x57c   :  { %1577 = vsyncpa [#allocation5 + $0x1], 1 }
 0x57d   :  { %1578 = vsyncpa [#allocation8], 1 }
 0x57e   :  { %1580 = vsyncpa [#allocation8 + $0x1], 1 }
 0x57f   :  { %1581 = vsyncpa [#allocation11], 1 }
 0x580   :  { %1582 = vsyncpa [#allocation6], 1 }
 0x581   :  { %1584 = vsyncpa [#allocation6 + $0x1], 1 }

</bundles_post_ra>
